<compile_context>
chip_gen: v6e
topology: v6e:2x2x1
jax: 0.10.0
libtpu: 0.0.40
codegen_flags: <defaults>
</compile_context>

<pallas_src>
import functools
import math

import jax
import jax.numpy as jnp
from jax.experimental import pallas as pl
from jax.experimental.pallas import tpu as pltpu


# bf16 operands on the MXU (f32 accumulation) -- native fast path on v5e/v6e/v7x.
_MM_DTYPE = jnp.bfloat16


# ---------------------------------------------------------------------------
# In-kernel math helpers
# ---------------------------------------------------------------------------

def _layernorm(x, w, b, eps=1e-5):
    # torch.nn.LayerNorm: biased variance, eps inside the sqrt.
    mu = jnp.mean(x, axis=-1, keepdims=True)
    xc = x - mu
    var = jnp.mean(xc * xc, axis=-1, keepdims=True)
    inv = jax.lax.rsqrt(var + eps)
    return xc * inv * w + b


def _erf(x):
    # Abramowitz & Stegun 7.1.26 rational approximation, |err| <= 1.5e-7
    # (matches torch.nn.GELU's exact-erf GELU to fp32 tolerance).
    # TODO(synk): switch to jax.lax.erf once its Mosaic lowering is confirmed, so
    # the transcendental lands fully on the EUP instead of ~10 VALU ops.
    a1, a2, a3, a4, a5 = 0.254829592, -0.284496736, 1.421413741, -1.453152027, 1.061405429
    p = 0.3275911
    sgn = jnp.where(x >= 0.0, 1.0, -1.0)
    ax = jnp.abs(x)
    t = 1.0 / (1.0 + p * ax)
    poly = ((((a5 * t + a4) * t + a3) * t + a2) * t + a1) * t
    return sgn * (1.0 - poly * jnp.exp(-ax * ax))


def _gelu_exact(x):
    return 0.5 * x * (1.0 + _erf(x * (1.0 / math.sqrt(2.0))))


def _mm(a, b):
    """2-D matmul, bf16 operands, f32 accumulation."""
    return jax.lax.dot_general(
        a.astype(_MM_DTYPE), b.astype(_MM_DTYPE),
        (((1,), (0,)), ((), ())),
        preferred_element_type=jnp.float32)


def _mm_nt(a, b):
    """a @ b.T for 2-D operands (contract the last dim of both)."""
    return jax.lax.dot_general(
        a.astype(_MM_DTYPE), b.astype(_MM_DTYPE),
        (((1,), (1,)), ((), ())),
        preferred_element_type=jnp.float32)


# ---------------------------------------------------------------------------
# Fused kernel: all Blocks + ln_f.  Grid = (n_layer,), activation resident in o_ref.
# ---------------------------------------------------------------------------

def transformer_kernel(x_ref, bidq_ref, bidk_ref,
                       ln1_w_ref, ln1_b_ref,
                       wqkv_ref, bqkv_ref, wproj_ref, bproj_ref,
                       ln2_w_ref, ln2_b_ref,
                       wfc_ref, bfc_ref, wfc2_ref, bfc2_ref,
                       lnf_w_ref, lnf_b_ref,
                       o_ref,
                       qkv_sc, attn_sc, *, n_head):
    layer = pl.program_id(0)
    last = pl.num_programs(0) - 1

    # o_ref has a CONSTANT block index across the layer axis => stays in VMEM and
    # doubles as the cross-layer activation carrier (no extra scratch / copy).
    # NOTE: this requires the layer grid axis to remain "arbitrary" (sequential).
    @pl.when(layer == 0)
    def _():
        o_ref[...] = x_ref[...]

    x = o_ref[...]                          # (BS, C) f32 residual stream
    BS, C = x.shape
    H = n_head
    hd = C // H

    # ---- CausalSelfAttention (F.sdpa default => NON-causal) ----
    h = _layernorm(x, ln1_w_ref[0], ln1_b_ref[0])
    # fused, lane-dense QKV projection: (BS, C) @ (C, 3C)  [1/sqrt(hd) folded into Q]
    qkv_sc[...] = _mm(h, wqkv_ref[0]) + bqkv_ref[0]

    # cross-batch additive mask built in-kernel from two tiny batch-id vectors:
    # a query row may only attend to key columns of the same batch element.
    neg = jnp.where(bidq_ref[...] == bidk_ref[...], 0.0, -1e30)   # (BS, BS) f32

    # Per-head attention (statically unrolled; the hd-sized matmuls are inherent).
    # TODO(synk): for long sequences tile KV with an online (flash-style) softmax so
    # peak VMEM is O(tq*tk) per head -- needed to stay inside v7x's 64 MiB VMEM.
    for hh in range(H):
        lo = hh * hd
        q_h = qkv_sc[:, lo:lo + hd]                     # (BS, hd)
        k_h = qkv_sc[:, C + lo:C + lo + hd]
        v_h = qkv_sc[:, 2 * C + lo:2 * C + lo + hd]
        s = _mm_nt(q_h, k_h) + neg                      # (BS, BS) f32
        s = s - jnp.max(s, axis=-1, keepdims=True)
        p = jnp.exp(s)
        p = p * pl.reciprocal(jnp.sum(p, axis=-1, keepdims=True), approx=True)
        attn_sc[:, lo:lo + hd] = _mm(p, v_h)            # (BS, hd)

    # fused output projection on head-concatenated result: (BS, C) @ (C, C)
    x = x + _mm(attn_sc[...], wproj_ref[0]) + bproj_ref[0]       # dropout_1 == identity

    # ---- MLP ----
    h = _layernorm(x, ln2_w_ref[0], ln2_b_ref[0])
    h = _mm(h, wfc_ref[0]) + bfc_ref[0]                 # (BS, 4C) lane-dense
    h = _gelu_exact(h)
    h = _mm(h, wfc2_ref[0]) + bfc2_ref[0]
    x = x + h                                           # dropout_2 == identity

    @pl.when(layer < last)
    def _():
        o_ref[...] = x                                  # carry residual to next layer

    @pl.when(layer == last)
    def _():
        o_ref[...] = _layernorm(x, lnf_w_ref[...], lnf_b_ref[...])


# ---------------------------------------------------------------------------
# Host-side packing + pallas_call wrapper
# ---------------------------------------------------------------------------

def _stacked_spec(arr):
    nd = arr.ndim
    blk = (1,) + tuple(arr.shape[1:])
    return pl.BlockSpec(blk, lambda l, _n=nd: (l,) + (0,) * (_n - 1))


def _whole_spec(arr):
    nd = arr.ndim
    return pl.BlockSpec(tuple(arr.shape), lambda l, _n=nd: (0,) * _n)


_PARAM_KEYS = ('ln1_w', 'ln1_b', 'wqkv', 'bqkv', 'wproj', 'bproj',
               'ln2_w', 'ln2_b', 'wfc', 'bfc', 'wfc2', 'bfc2')
_BF16_KEYS = ('wqkv', 'wproj', 'wfc', 'wfc2')


def pack_block_params(blocks, n_head):
    """Stack per-layer params on a leading layer axis; fold the 1/sqrt(hd) scale
    into the Q third of the fused QKV weight/bias; store matmul weights as bf16."""
    C = blocks[0]['wqkv'].shape[0]
    hd = C // n_head
    scale = 1.0 / math.sqrt(hd)
    col_scale = jnp.concatenate(
        [jnp.full((C,), scale, jnp.float32), jnp.ones((2 * C,), jnp.float32)])[None, :]

    acc = {k: [] for k in _PARAM_KEYS}
    for lp in blocks:
        acc['ln1_w'].append(lp['ln1_w']);  acc['ln1_b'].append(lp['ln1_b'])
        acc['wqkv'].append(lp['wqkv'] * col_scale)      # fold attention scale into Q
        acc['bqkv'].append(lp['bqkv'] * col_scale)
        acc['wproj'].append(lp['wproj']); acc['bproj'].append(lp['bproj'])
        acc['ln2_w'].append(lp['ln2_w']);  acc['ln2_b'].append(lp['ln2_b'])
        acc['wfc'].append(lp['wfc']);      acc['bfc'].append(lp['bfc'])
        acc['wfc2'].append(lp['wfc2']);    acc['bfc2'].append(lp['bfc2'])

    stacked = []
    for k in _PARAM_KEYS:
        arr = jnp.stack(acc[k], axis=0)
        if k in _BF16_KEYS:
            arr = arr.astype(jnp.bfloat16)   # native MXU dtype, half HBM/VMEM bytes
        stacked.append(arr)
    return stacked


def transformer_forward(squares, special_tokens, params, cfg):
    """Mirrors Transformer.forward(squares, special_tokens)."""
    B, T = squares.shape
    C = cfg['n_embd']
    H = cfg['n_head']
    L = cfg['n_layer']
    assert T <= cfg['squares_size'], (
        f"Cannot forward sequence of length {T}, block size is only {cfg['squares_size']}")
    S = T + cfg['special_size']
    BS = B * S

    # --- embedding glue (plain JAX) ---
    pos = jnp.arange(T, dtype=jnp.int32)
    tok_emb = jnp.take(params['wte'], squares, axis=0)            # (B, T, C)
    pos_emb = jnp.take(params['wpe'], pos, axis=0)                # (T, C)
    special_emb = jnp.broadcast_to(
        special_tokens[:, :, None], (B, cfg['special_size'], C)).astype(jnp.float32)
    x = jnp.concatenate([tok_emb + pos_emb[None], special_emb], axis=1)  # (B, S, C)
    x2 = x.reshape(BS, C)

    # tiny O(BS) batch-id vectors -> in-kernel cross-batch mask (no BS^2 input)
    row_b = (jnp.arange(BS, dtype=jnp.int32) // S).astype(jnp.int32)
    bid_q = row_b.reshape(BS, 1)
    bid_k = row_b.reshape(1, BS)

    stacked = pack_block_params(params['blocks'], H)
    lnf_w, lnf_b = params['ln_f_w'], params['ln_f_b']

    kernel = functools.partial(transformer_kernel, n_head=H)

    in_specs = ([_whole_spec(x2), _whole_spec(bid_q), _whole_spec(bid_k)]
                + [_stacked_spec(w) for w in stacked]
                + [_whole_spec(lnf_w), _whole_spec(lnf_b)])

    # VMEM budget: double-buffered per-layer bf16 weight block + activations,
    # scratches, MLP hidden and one head's score/prob buffers, with headroom.
    wbytes = 2 * sum(int(w.size // L) * w.dtype.itemsize for w in stacked)
    abytes = (2 * BS * C + BS * 3 * C + BS * C + BS * 4 * C + 3 * BS * BS) * 4
    vmem_limit = min(max(int(1.5 * (wbytes + abytes)) + (4 << 20), 32 << 20), 100 << 20)

    out2 = pl.pallas_call(
        kernel,
        out_shape=jax.ShapeDtypeStruct((BS, C), jnp.float32),
        grid=(L,),
        in_specs=in_specs,
        out_specs=pl.BlockSpec((BS, C), lambda l: (0, 0)),
        scratch_shapes=[pltpu.VMEM((BS, 3 * C), jnp.float32),    # fused QKV
                        pltpu.VMEM((BS, C), jnp.float32)],       # head-concat attn out
        compiler_params=pltpu.CompilerParams(
            dimension_semantics=("arbitrary",),   # layer axis carries the activation
            vmem_limit_bytes=vmem_limit),
    )(x2, bid_q, bid_k, *stacked, lnf_w, lnf_b)

    # TODO(synk): on v7x add a leading "parallel" grid axis over batch elements /
    # query-row tiles to engage the second TensorCore (BS=24 here is a single tile).
    # TODO(synk): for tiny C (< 128 like this demo) the lane axis is under-filled;
    # zero-padding C to 128 would need LayerNorm masking, so it is left unpadded.
    return out2.reshape(B, S, C)


# ---------------------------------------------------------------------------
# Deterministic parameter init (synthetic; shapes follow the module's __init__)
# ---------------------------------------------------------------------------

def init_params(key, cfg):
    C = cfg['n_embd']
    keys = jax.random.split(key, 2 + cfg['n_layer'])
    params = {
        'wte': 0.02 * jax.random.normal(keys[0], (cfg['vocab_size'], C), jnp.float32),
        'wpe': 0.02 * jax.random.normal(keys[1], (cfg['squares_size'], C), jnp.float32),
        'ln_f_w': jnp.ones((1, C), jnp.float32),
        'ln_f_b': jnp.zeros((1, C), jnp.float32),
        'blocks': [],
    }
    for l in range(cfg['n_layer']):
        k = jax.random.split(keys[2 + l], 4)
        lp = {
            'ln1_w': jnp.ones((1, C), jnp.float32),
            'ln1_b': jnp.zeros((1, C), jnp.float32),
            'wqkv':  0.02 * jax.random.normal(k[0], (C, 3 * C), jnp.float32),
            'bqkv':  jnp.zeros((1, 3 * C), jnp.float32),
            'wproj': 0.02 * jax.random.normal(k[1], (C, C), jnp.float32),
            'bproj': jnp.zeros((1, C), jnp.float32),
            'ln2_w': jnp.ones((1, C), jnp.float32),
            'ln2_b': jnp.zeros((1, C), jnp.float32),
            'wfc':   0.02 * jax.random.normal(k[2], (C, 4 * C), jnp.float32),
            'bfc':   jnp.zeros((1, 4 * C), jnp.float32),
            'wfc2':  0.02 * jax.random.normal(k[3], (4 * C, C), jnp.float32),
            'bfc2':  jnp.zeros((1, C), jnp.float32),
        }
        params['blocks'].append(lp)
    return params


# ---------------------------------------------------------------------------

if __name__ == "__main__":
    cfg = dict(vocab_size=16, squares_size=16, special_size=4,
               n_embd=32, n_head=4, n_layer=2, dropout=0.0)

    key = jax.random.PRNGKey(0)
    k_sq, k_sp, k_par = jax.random.split(key, 3)

    B, T = 2, 8
    squares = jax.random.randint(k_sq, (B, T), 0, cfg['vocab_size'], dtype=jnp.int32)
    special_tokens = jax.random.normal(k_sp, (B, cfg['special_size']), jnp.float32)
    params = init_params(k_par, cfg)

    out = transformer_forward(squares, special_tokens, params, cfg)  # (B, T+special, C)
    jax.block_until_ready(out)
    assert out.shape == (B, T + cfg['special_size'], cfg['n_embd'])
    assert bool(jnp.all(jnp.isfinite(out)))
    print("KERNEL_OK")
</pallas_src>

<mosaic_0001>
module attributes {stable_mosaic.version = 11 : i64} {
  func.func @transformer_kernel(%arg0: i32, %arg1: memref<24x32xf32, #tpu.memory_space<vmem>>, %arg2: memref<24x1xi32, #tpu.memory_space<vmem>>, %arg3: memref<1x24xi32, #tpu.memory_space<vmem>>, %arg4: memref<1x1x32xf32, #tpu.memory_space<vmem>>, %arg5: memref<1x1x32xf32, #tpu.memory_space<vmem>>, %arg6: memref<1x32x96xbf16, #tpu.memory_space<vmem>>, %arg7: memref<1x1x96xf32, #tpu.memory_space<vmem>>, %arg8: memref<1x32x32xbf16, #tpu.memory_space<vmem>>, %arg9: memref<1x1x32xf32, #tpu.memory_space<vmem>>, %arg10: memref<1x1x32xf32, #tpu.memory_space<vmem>>, %arg11: memref<1x1x32xf32, #tpu.memory_space<vmem>>, %arg12: memref<1x32x128xbf16, #tpu.memory_space<vmem>>, %arg13: memref<1x1x128xf32, #tpu.memory_space<vmem>>, %arg14: memref<1x128x32xbf16, #tpu.memory_space<vmem>>, %arg15: memref<1x1x32xf32, #tpu.memory_space<vmem>>, %arg16: memref<1x32xf32, #tpu.memory_space<vmem>>, %arg17: memref<1x32xf32, #tpu.memory_space<vmem>>, %arg18: memref<24x32xf32, #tpu.memory_space<vmem>>, %arg19: memref<24x96xf32, #tpu.memory_space<vmem>>, %arg20: memref<24x32xf32, #tpu.memory_space<vmem>>) attributes {dimension_semantics = [#tpu.dimension_semantics<arbitrary>], iteration_bounds = array<i64: 2>, scalar_prefetch = 0 : i64, scratch_operands = 2 : i64, tpu.core_type = #tpu.core_type<tc>, window_params = [{pipeline_mode = #tpu.pipeline_mode<synchronous>, transform_indices = @transform_0, window_bounds = array<i64: 24, 32>}, {pipeline_mode = #tpu.pipeline_mode<synchronous>, transform_indices = @transform_1, window_bounds = array<i64: 24, 1>}, {pipeline_mode = #tpu.pipeline_mode<synchronous>, transform_indices = @transform_2, window_bounds = array<i64: 1, 24>}, {transform_indices = @transform_3, window_bounds = array<i64: 1, 1, 32>}, {transform_indices = @transform_4, window_bounds = array<i64: 1, 1, 32>}, {transform_indices = @transform_5, window_bounds = array<i64: 1, 32, 96>}, {transform_indices = @transform_6, window_bounds = array<i64: 1, 1, 96>}, {transform_indices = @transform_7, window_bounds = array<i64: 1, 32, 32>}, {transform_indices = @transform_8, window_bounds = array<i64: 1, 1, 32>}, {transform_indices = @transform_9, window_bounds = array<i64: 1, 1, 32>}, {transform_indices = @transform_10, window_bounds = array<i64: 1, 1, 32>}, {transform_indices = @transform_11, window_bounds = array<i64: 1, 32, 128>}, {transform_indices = @transform_12, window_bounds = array<i64: 1, 1, 128>}, {transform_indices = @transform_13, window_bounds = array<i64: 1, 128, 32>}, {transform_indices = @transform_14, window_bounds = array<i64: 1, 1, 32>}, {pipeline_mode = #tpu.pipeline_mode<synchronous>, transform_indices = @transform_15, window_bounds = array<i64: 1, 32>}, {pipeline_mode = #tpu.pipeline_mode<synchronous>, transform_indices = @transform_16, window_bounds = array<i64: 1, 32>}, {pipeline_mode = #tpu.pipeline_mode<synchronous>, transform_indices = @transform_17, window_bounds = array<i64: 24, 32>}]} {
    %c0_i32 = arith.constant 0 : i32
    %0 = arith.cmpi eq, %arg0, %c0_i32 : i32
    %1 = arith.extui %0 : i1 to i32
    %c0_i32_0 = arith.constant 0 : i32
    %2 = arith.cmpi ne, %1, %c0_i32_0 : i32
    scf.if %2 {
      %c0_117 = arith.constant 0 : index
      %c0_118 = arith.constant 0 : index
      %227 = vector.load %arg1[%c0_117, %c0_118] : memref<24x32xf32, #tpu.memory_space<vmem>>, vector<24x32xf32>
      %c0_119 = arith.constant 0 : index
      %c0_120 = arith.constant 0 : index
      %228 = vector.load %arg18[%c0_119, %c0_120] : memref<24x32xf32, #tpu.memory_space<vmem>>, vector<24x32xf32>
      tpu.vector_store %arg18[%c0_119, %c0_120], %227 {strides = array<i32>} : memref<24x32xf32, #tpu.memory_space<vmem>>, vector<24x32xf32>,
    } else {
    }
    %c0 = arith.constant 0 : index
    %c0_1 = arith.constant 0 : index
    %3 = vector.load %arg18[%c0, %c0_1] : memref<24x32xf32, #tpu.memory_space<vmem>>, vector<24x32xf32>
    %c0_2 = arith.constant 0 : index
    %c0_3 = arith.constant 0 : index
    %c0_4 = arith.constant 0 : index
    %4 = vector.load %arg4[%c0_2, %c0_3, %c0_4] : memref<1x1x32xf32, #tpu.memory_space<vmem>>, vector<1x1x32xf32>
    %5 = vector.shape_cast %4 : vector<1x1x32xf32> to vector<1x32xf32>
    %c0_5 = arith.constant 0 : index
    %c0_6 = arith.constant 0 : index
    %c0_7 = arith.constant 0 : index
    %6 = vector.load %arg5[%c0_5, %c0_6, %c0_7] : memref<1x1x32xf32, #tpu.memory_space<vmem>>, vector<1x1x32xf32>
    %7 = vector.shape_cast %6 : vector<1x1x32xf32> to vector<1x32xf32>
    %cst = arith.constant dense<0.000000e+00> : vector<24xf32>
    %8 = vector.multi_reduction <add>, %3, %cst [1] : vector<24x32xf32> to vector<24xf32>
    %9 = vector.shape_cast %8 : vector<24xf32> to vector<24x1xf32>
    %cst_8 = arith.constant 3.200000e+01 : f32
    %10 = vector.broadcast %cst_8 : f32 to vector<24x1xf32>
    %11 = arith.divf %9, %10 : vector<24x1xf32>
    %12 = vector.broadcast %11 : vector<24x1xf32> to vector<24x32xf32>
    %13 = arith.subf %3, %12 : vector<24x32xf32>
    %14 = arith.mulf %13, %13 : vector<24x32xf32>
    %cst_9 = arith.constant dense<0.000000e+00> : vector<24xf32>
    %15 = vector.multi_reduction <add>, %14, %cst_9 [1] : vector<24x32xf32> to vector<24xf32>
    %16 = vector.shape_cast %15 : vector<24xf32> to vector<24x1xf32>
    %cst_10 = arith.constant 3.200000e+01 : f32
    %17 = vector.broadcast %cst_10 : f32 to vector<24x1xf32>
    %18 = arith.divf %16, %17 : vector<24x1xf32>
    %cst_11 = arith.constant 9.99999974E-6 : f32
    %19 = vector.broadcast %cst_11 : f32 to vector<24x1xf32>
    %20 = arith.addf %18, %19 : vector<24x1xf32>
    %21 = math.rsqrt %20 : vector<24x1xf32>
    %22 = vector.broadcast %21 : vector<24x1xf32> to vector<24x32xf32>
    %23 = arith.mulf %13, %22 : vector<24x32xf32>
    %24 = vector.broadcast %5 : vector<1x32xf32> to vector<24x32xf32>
    %25 = arith.mulf %23, %24 : vector<24x32xf32>
    %26 = vector.broadcast %7 : vector<1x32xf32> to vector<24x32xf32>
    %27 = arith.addf %25, %26 : vector<24x32xf32>
    %c0_12 = arith.constant 0 : index
    %c0_13 = arith.constant 0 : index
    %c0_14 = arith.constant 0 : index
    %28 = vector.load %arg6[%c0_12, %c0_13, %c0_14] : memref<1x32x96xbf16, #tpu.memory_space<vmem>>, vector<1x32x96xbf16>
    %29 = vector.shape_cast %28 : vector<1x32x96xbf16> to vector<32x96xbf16>
    %30 = arith.truncf %27 : vector<24x32xf32> to vector<24x32xbf16>
    %cst_15 = arith.constant dense<0.000000e+00> : vector<24x96xf32>
    %31 = tpu.matmul %30, %29, %cst_15 {dimension_numbers = #tpu.dot_dimension_numbers<[1], [0], [0], [1], [0, 0, 1, 1], [], []>} : vector<24x32xbf16>, vector<32x96xbf16>, vector<24x96xf32> -> vector<24x96xf32>
    %c0_16 = arith.constant 0 : index
    %c0_17 = arith.constant 0 : index
    %c0_18 = arith.constant 0 : index
    %32 = vector.load %arg7[%c0_16, %c0_17, %c0_18] : memref<1x1x96xf32, #tpu.memory_space<vmem>>, vector<1x1x96xf32>
    %33 = vector.shape_cast %32 : vector<1x1x96xf32> to vector<1x96xf32>
    %34 = vector.broadcast %33 : vector<1x96xf32> to vector<24x96xf32>
    %35 = arith.addf %31, %34 : vector<24x96xf32>
    %c0_19 = arith.constant 0 : index
    %c0_20 = arith.constant 0 : index
    %36 = vector.load %arg19[%c0_19, %c0_20] : memref<24x96xf32, #tpu.memory_space<vmem>>, vector<24x96xf32>
    tpu.vector_store %arg19[%c0_19, %c0_20], %35 {strides = array<i32>} : memref<24x96xf32, #tpu.memory_space<vmem>>, vector<24x96xf32>,
    %c0_21 = arith.constant 0 : index
    %c0_22 = arith.constant 0 : index
    %37 = vector.load %arg2[%c0_21, %c0_22] : memref<24x1xi32, #tpu.memory_space<vmem>>, vector<24x1xi32>
    %c0_23 = arith.constant 0 : index
    %c0_24 = arith.constant 0 : index
    %38 = vector.load %arg3[%c0_23, %c0_24] : memref<1x24xi32, #tpu.memory_space<vmem>>, vector<1x24xi32>
    %39 = vector.broadcast %37 : vector<24x1xi32> to vector<24x24xi32>
    %40 = vector.broadcast %38 : vector<1x24xi32> to vector<24x24xi32>
    %41 = arith.cmpi eq, %39, %40 : vector<24x24xi32>
    %cst_25 = arith.constant 0.000000e+00 : f32
    %cst_26 = arith.constant -1.000000e+30 : f32
    %42 = vector.broadcast %cst_25 : f32 to vector<24x24xf32>
    %43 = vector.broadcast %cst_26 : f32 to vector<24x24xf32>
    %44 = arith.select %41, %42, %43 : vector<24x24xi1>, vector<24x24xf32>
    %c0_27 = arith.constant 0 : index
    %c0_28 = arith.constant 0 : index
    %45 = vector.load %arg19[%c0_27, %c0_28] : memref<24x96xf32, #tpu.memory_space<vmem>>, vector<24x8xf32>
    %c0_29 = arith.constant 0 : index
    %c32 = arith.constant 32 : index
    %46 = vector.load %arg19[%c0_29, %c32] : memref<24x96xf32, #tpu.memory_space<vmem>>, vector<24x8xf32>
    %c0_30 = arith.constant 0 : index
    %c64 = arith.constant 64 : index
    %47 = vector.load %arg19[%c0_30, %c64] : memref<24x96xf32, #tpu.memory_space<vmem>>, vector<24x8xf32>
    %48 = arith.truncf %45 : vector<24x8xf32> to vector<24x8xbf16>
    %49 = arith.truncf %46 : vector<24x8xf32> to vector<24x8xbf16>
    %cst_31 = arith.constant dense<0.000000e+00> : vector<24x24xf32>
    %50 = tpu.matmul %48, %49, %cst_31 {dimension_numbers = #tpu.dot_dimension_numbers<[1], [1], [0], [0], [0, 0, 1, 0], [], []>} : vector<24x8xbf16>, vector<24x8xbf16>, vector<24x24xf32> -> vector<24x24xf32>
    %51 = arith.addf %50, %44 : vector<24x24xf32>
    %cst_32 = arith.constant dense<0xFF800000> : vector<24xf32>
    %52 = vector.multi_reduction <maximumf>, %51, %cst_32 [1] : vector<24x24xf32> to vector<24xf32>
    %53 = vector.shape_cast %52 : vector<24xf32> to vector<24x1xf32>
    %54 = vector.broadcast %53 : vector<24x1xf32> to vector<24x24xf32>
    %55 = arith.subf %51, %54 : vector<24x24xf32>
    %56 = math.exp %55 : vector<24x24xf32>
    %cst_33 = arith.constant dense<0.000000e+00> : vector<24xf32>
    %57 = vector.multi_reduction <add>, %56, %cst_33 [1] : vector<24x24xf32> to vector<24xf32>
    %58 = vector.shape_cast %57 : vector<24xf32> to vector<24x1xf32>
    %59 = tpu.reciprocal %58 {approx = true} : vector<24x1xf32> -> vector<24x1xf32>
    %60 = vector.broadcast %59 : vector<24x1xf32> to vector<24x24xf32>
    %61 = arith.mulf %56, %60 : vector<24x24xf32>
    %62 = arith.truncf %61 : vector<24x24xf32> to vector<24x24xbf16>
    %63 = arith.truncf %47 : vector<24x8xf32> to vector<24x8xbf16>
    %cst_34 = arith.constant dense<0.000000e+00> : vector<24x8xf32>
    %64 = tpu.matmul %62, %63, %cst_34 {dimension_numbers = #tpu.dot_dimension_numbers<[1], [0], [0], [1], [0, 0, 1, 1], [], []>} : vector<24x24xbf16>, vector<24x8xbf16>, vector<24x8xf32> -> vector<24x8xf32>
    %c0_35 = arith.constant 0 : index
    %c0_36 = arith.constant 0 : index
    %65 = vector.load %arg20[%c0_35, %c0_36] : memref<24x32xf32, #tpu.memory_space<vmem>>, vector<24x8xf32>
    tpu.vector_store %arg20[%c0_35, %c0_36], %64 {strides = array<i32>} : memref<24x32xf32, #tpu.memory_space<vmem>>, vector<24x8xf32>,
    %c0_37 = arith.constant 0 : index
    %c8 = arith.constant 8 : index
    %66 = vector.load %arg19[%c0_37, %c8] : memref<24x96xf32, #tpu.memory_space<vmem>>, vector<24x8xf32>
    %c0_38 = arith.constant 0 : index
    %c40 = arith.constant 40 : index
    %67 = vector.load %arg19[%c0_38, %c40] : memref<24x96xf32, #tpu.memory_space<vmem>>, vector<24x8xf32>
    %c0_39 = arith.constant 0 : index
    %c72 = arith.constant 72 : index
    %68 = vector.load %arg19[%c0_39, %c72] : memref<24x96xf32, #tpu.memory_space<vmem>>, vector<24x8xf32>
    %69 = arith.truncf %66 : vector<24x8xf32> to vector<24x8xbf16>
    %70 = arith.truncf %67 : vector<24x8xf32> to vector<24x8xbf16>
    %cst_40 = arith.constant dense<0.000000e+00> : vector<24x24xf32>
    %71 = tpu.matmul %69, %70, %cst_40 {dimension_numbers = #tpu.dot_dimension_numbers<[1], [1], [0], [0], [0, 0, 1, 0], [], []>} : vector<24x8xbf16>, vector<24x8xbf16>, vector<24x24xf32> -> vector<24x24xf32>
    %72 = arith.addf %71, %44 : vector<24x24xf32>
    %cst_41 = arith.constant dense<0xFF800000> : vector<24xf32>
    %73 = vector.multi_reduction <maximumf>, %72, %cst_41 [1] : vector<24x24xf32> to vector<24xf32>
    %74 = vector.shape_cast %73 : vector<24xf32> to vector<24x1xf32>
    %75 = vector.broadcast %74 : vector<24x1xf32> to vector<24x24xf32>
    %76 = arith.subf %72, %75 : vector<24x24xf32>
    %77 = math.exp %76 : vector<24x24xf32>
    %cst_42 = arith.constant dense<0.000000e+00> : vector<24xf32>
    %78 = vector.multi_reduction <add>, %77, %cst_42 [1] : vector<24x24xf32> to vector<24xf32>
    %79 = vector.shape_cast %78 : vector<24xf32> to vector<24x1xf32>
    %80 = tpu.reciprocal %79 {approx = true} : vector<24x1xf32> -> vector<24x1xf32>
    %81 = vector.broadcast %80 : vector<24x1xf32> to vector<24x24xf32>
    %82 = arith.mulf %77, %81 : vector<24x24xf32>
    %83 = arith.truncf %82 : vector<24x24xf32> to vector<24x24xbf16>
    %84 = arith.truncf %68 : vector<24x8xf32> to vector<24x8xbf16>
    %cst_43 = arith.constant dense<0.000000e+00> : vector<24x8xf32>
    %85 = tpu.matmul %83, %84, %cst_43 {dimension_numbers = #tpu.dot_dimension_numbers<[1], [0], [0], [1], [0, 0, 1, 1], [], []>} : vector<24x24xbf16>, vector<24x8xbf16>, vector<24x8xf32> -> vector<24x8xf32>
    %c0_44 = arith.constant 0 : index
    %c8_45 = arith.constant 8 : index
    %86 = vector.load %arg20[%c0_44, %c8_45] : memref<24x32xf32, #tpu.memory_space<vmem>>, vector<24x8xf32>
    tpu.vector_store %arg20[%c0_44, %c8_45], %85 {strides = array<i32>} : memref<24x32xf32, #tpu.memory_space<vmem>>, vector<24x8xf32>,
    %c0_46 = arith.constant 0 : index
    %c16 = arith.constant 16 : index
    %87 = vector.load %arg19[%c0_46, %c16] : memref<24x96xf32, #tpu.memory_space<vmem>>, vector<24x8xf32>
    %c0_47 = arith.constant 0 : index
    %c48 = arith.constant 48 : index
    %88 = vector.load %arg19[%c0_47, %c48] : memref<24x96xf32, #tpu.memory_space<vmem>>, vector<24x8xf32>
    %c0_48 = arith.constant 0 : index
    %c80 = arith.constant 80 : index
    %89 = vector.load %arg19[%c0_48, %c80] : memref<24x96xf32, #tpu.memory_space<vmem>>, vector<24x8xf32>
    %90 = arith.truncf %87 : vector<24x8xf32> to vector<24x8xbf16>
    %91 = arith.truncf %88 : vector<24x8xf32> to vector<24x8xbf16>
    %cst_49 = arith.constant dense<0.000000e+00> : vector<24x24xf32>
    %92 = tpu.matmul %90, %91, %cst_49 {dimension_numbers = #tpu.dot_dimension_numbers<[1], [1], [0], [0], [0, 0, 1, 0], [], []>} : vector<24x8xbf16>, vector<24x8xbf16>, vector<24x24xf32> -> vector<24x24xf32>
    %93 = arith.addf %92, %44 : vector<24x24xf32>
    %cst_50 = arith.constant dense<0xFF800000> : vector<24xf32>
    %94 = vector.multi_reduction <maximumf>, %93, %cst_50 [1] : vector<24x24xf32> to vector<24xf32>
    %95 = vector.shape_cast %94 : vector<24xf32> to vector<24x1xf32>
    %96 = vector.broadcast %95 : vector<24x1xf32> to vector<24x24xf32>
    %97 = arith.subf %93, %96 : vector<24x24xf32>
    %98 = math.exp %97 : vector<24x24xf32>
    %cst_51 = arith.constant dense<0.000000e+00> : vector<24xf32>
    %99 = vector.multi_reduction <add>, %98, %cst_51 [1] : vector<24x24xf32> to vector<24xf32>
    %100 = vector.shape_cast %99 : vector<24xf32> to vector<24x1xf32>
    %101 = tpu.reciprocal %100 {approx = true} : vector<24x1xf32> -> vector<24x1xf32>
    %102 = vector.broadcast %101 : vector<24x1xf32> to vector<24x24xf32>
    %103 = arith.mulf %98, %102 : vector<24x24xf32>
    %104 = arith.truncf %103 : vector<24x24xf32> to vector<24x24xbf16>
    %105 = arith.truncf %89 : vector<24x8xf32> to vector<24x8xbf16>
    %cst_52 = arith.constant dense<0.000000e+00> : vector<24x8xf32>
    %106 = tpu.matmul %104, %105, %cst_52 {dimension_numbers = #tpu.dot_dimension_numbers<[1], [0], [0], [1], [0, 0, 1, 1], [], []>} : vector<24x24xbf16>, vector<24x8xbf16>, vector<24x8xf32> -> vector<24x8xf32>
    %c0_53 = arith.constant 0 : index
    %c16_54 = arith.constant 16 : index
    %107 = vector.load %arg20[%c0_53, %c16_54] : memref<24x32xf32, #tpu.memory_space<vmem>>, vector<24x8xf32>
    tpu.vector_store %arg20[%c0_53, %c16_54], %106 {strides = array<i32>} : memref<24x32xf32, #tpu.memory_space<vmem>>, vector<24x8xf32>,
    %c0_55 = arith.constant 0 : index
    %c24 = arith.constant 24 : index
    %108 = vector.load %arg19[%c0_55, %c24] : memref<24x96xf32, #tpu.memory_space<vmem>>, vector<24x8xf32>
    %c0_56 = arith.constant 0 : index
    %c56 = arith.constant 56 : index
    %109 = vector.load %arg19[%c0_56, %c56] : memref<24x96xf32, #tpu.memory_space<vmem>>, vector<24x8xf32>
    %c0_57 = arith.constant 0 : index
    %c88 = arith.constant 88 : index
    %110 = vector.load %arg19[%c0_57, %c88] : memref<24x96xf32, #tpu.memory_space<vmem>>, vector<24x8xf32>
    %111 = arith.truncf %108 : vector<24x8xf32> to vector<24x8xbf16>
    %112 = arith.truncf %109 : vector<24x8xf32> to vector<24x8xbf16>
    %cst_58 = arith.constant dense<0.000000e+00> : vector<24x24xf32>
    %113 = tpu.matmul %111, %112, %cst_58 {dimension_numbers = #tpu.dot_dimension_numbers<[1], [1], [0], [0], [0, 0, 1, 0], [], []>} : vector<24x8xbf16>, vector<24x8xbf16>, vector<24x24xf32> -> vector<24x24xf32>
    %114 = arith.addf %113, %44 : vector<24x24xf32>
    %cst_59 = arith.constant dense<0xFF800000> : vector<24xf32>
    %115 = vector.multi_reduction <maximumf>, %114, %cst_59 [1] : vector<24x24xf32> to vector<24xf32>
    %116 = vector.shape_cast %115 : vector<24xf32> to vector<24x1xf32>
    %117 = vector.broadcast %116 : vector<24x1xf32> to vector<24x24xf32>
    %118 = arith.subf %114, %117 : vector<24x24xf32>
    %119 = math.exp %118 : vector<24x24xf32>
    %cst_60 = arith.constant dense<0.000000e+00> : vector<24xf32>
    %120 = vector.multi_reduction <add>, %119, %cst_60 [1] : vector<24x24xf32> to vector<24xf32>
    %121 = vector.shape_cast %120 : vector<24xf32> to vector<24x1xf32>
    %122 = tpu.reciprocal %121 {approx = true} : vector<24x1xf32> -> vector<24x1xf32>
    %123 = vector.broadcast %122 : vector<24x1xf32> to vector<24x24xf32>
    %124 = arith.mulf %119, %123 : vector<24x24xf32>
    %125 = arith.truncf %124 : vector<24x24xf32> to vector<24x24xbf16>
    %126 = arith.truncf %110 : vector<24x8xf32> to vector<24x8xbf16>
    %cst_61 = arith.constant dense<0.000000e+00> : vector<24x8xf32>
    %127 = tpu.matmul %125, %126, %cst_61 {dimension_numbers = #tpu.dot_dimension_numbers<[1], [0], [0], [1], [0, 0, 1, 1], [], []>} : vector<24x24xbf16>, vector<24x8xbf16>, vector<24x8xf32> -> vector<24x8xf32>
    %c0_62 = arith.constant 0 : index
    %c24_63 = arith.constant 24 : index
    %128 = vector.load %arg20[%c0_62, %c24_63] : memref<24x32xf32, #tpu.memory_space<vmem>>, vector<24x8xf32>
    tpu.vector_store %arg20[%c0_62, %c24_63], %127 {strides = array<i32>} : memref<24x32xf32, #tpu.memory_space<vmem>>, vector<24x8xf32>,
    %c0_64 = arith.constant 0 : index
    %c0_65 = arith.constant 0 : index
    %129 = vector.load %arg20[%c0_64, %c0_65] : memref<24x32xf32, #tpu.memory_space<vmem>>, vector<24x32xf32>
    %c0_66 = arith.constant 0 : index
    %c0_67 = arith.constant 0 : index
    %c0_68 = arith.constant 0 : index
    %130 = vector.load %arg8[%c0_66, %c0_67, %c0_68] : memref<1x32x32xbf16, #tpu.memory_space<vmem>>, vector<1x32x32xbf16>
    %131 = vector.shape_cast %130 : vector<1x32x32xbf16> to vector<32x32xbf16>
    %132 = arith.truncf %129 : vector<24x32xf32> to vector<24x32xbf16>
    %cst_69 = arith.constant dense<0.000000e+00> : vector<24x32xf32>
    %133 = tpu.matmul %132, %131, %cst_69 {dimension_numbers = #tpu.dot_dimension_numbers<[1], [0], [0], [1], [0, 0, 1, 1], [], []>} : vector<24x32xbf16>, vector<32x32xbf16>, vector<24x32xf32> -> vector<24x32xf32>
    %134 = arith.addf %3, %133 : vector<24x32xf32>
    %c0_70 = arith.constant 0 : index
    %c0_71 = arith.constant 0 : index
    %c0_72 = arith.constant 0 : index
    %135 = vector.load %arg9[%c0_70, %c0_71, %c0_72] : memref<1x1x32xf32, #tpu.memory_space<vmem>>, vector<1x1x32xf32>
    %136 = vector.shape_cast %135 : vector<1x1x32xf32> to vector<1x32xf32>
    %137 = vector.broadcast %136 : vector<1x32xf32> to vector<24x32xf32>
    %138 = arith.addf %134, %137 : vector<24x32xf32>
    %c0_73 = arith.constant 0 : index
    %c0_74 = arith.constant 0 : index
    %c0_75 = arith.constant 0 : index
    %139 = vector.load %arg10[%c0_73, %c0_74, %c0_75] : memref<1x1x32xf32, #tpu.memory_space<vmem>>, vector<1x1x32xf32>
    %140 = vector.shape_cast %139 : vector<1x1x32xf32> to vector<1x32xf32>
    %c0_76 = arith.constant 0 : index
    %c0_77 = arith.constant 0 : index
    %c0_78 = arith.constant 0 : index
    %141 = vector.load %arg11[%c0_76, %c0_77, %c0_78] : memref<1x1x32xf32, #tpu.memory_space<vmem>>, vector<1x1x32xf32>
    %142 = vector.shape_cast %141 : vector<1x1x32xf32> to vector<1x32xf32>
    %cst_79 = arith.constant dense<0.000000e+00> : vector<24xf32>
    %143 = vector.multi_reduction <add>, %138, %cst_79 [1] : vector<24x32xf32> to vector<24xf32>
    %144 = vector.shape_cast %143 : vector<24xf32> to vector<24x1xf32>
    %cst_80 = arith.constant 3.200000e+01 : f32
    %145 = vector.broadcast %cst_80 : f32 to vector<24x1xf32>
    %146 = arith.divf %144, %145 : vector<24x1xf32>
    %147 = vector.broadcast %146 : vector<24x1xf32> to vector<24x32xf32>
    %148 = arith.subf %138, %147 : vector<24x32xf32>
    %149 = arith.mulf %148, %148 : vector<24x32xf32>
    %cst_81 = arith.constant dense<0.000000e+00> : vector<24xf32>
    %150 = vector.multi_reduction <add>, %149, %cst_81 [1] : vector<24x32xf32> to vector<24xf32>
    %151 = vector.shape_cast %150 : vector<24xf32> to vector<24x1xf32>
    %cst_82 = arith.constant 3.200000e+01 : f32
    %152 = vector.broadcast %cst_82 : f32 to vector<24x1xf32>
    %153 = arith.divf %151, %152 : vector<24x1xf32>
    %cst_83 = arith.constant 9.99999974E-6 : f32
    %154 = vector.broadcast %cst_83 : f32 to vector<24x1xf32>
    %155 = arith.addf %153, %154 : vector<24x1xf32>
    %156 = math.rsqrt %155 : vector<24x1xf32>
    %157 = vector.broadcast %156 : vector<24x1xf32> to vector<24x32xf32>
    %158 = arith.mulf %148, %157 : vector<24x32xf32>
    %159 = vector.broadcast %140 : vector<1x32xf32> to vector<24x32xf32>
    %160 = arith.mulf %158, %159 : vector<24x32xf32>
    %161 = vector.broadcast %142 : vector<1x32xf32> to vector<24x32xf32>
    %162 = arith.addf %160, %161 : vector<24x32xf32>
    %c0_84 = arith.constant 0 : index
    %c0_85 = arith.constant 0 : index
    %c0_86 = arith.constant 0 : index
    %163 = vector.load %arg12[%c0_84, %c0_85, %c0_86] : memref<1x32x128xbf16, #tpu.memory_space<vmem>>, vector<1x32x128xbf16>
    %164 = vector.shape_cast %163 : vector<1x32x128xbf16> to vector<32x128xbf16>
    %165 = arith.truncf %162 : vector<24x32xf32> to vector<24x32xbf16>
    %cst_87 = arith.constant dense<0.000000e+00> : vector<24x128xf32>
    %166 = tpu.matmul %165, %164, %cst_87 {dimension_numbers = #tpu.dot_dimension_numbers<[1], [0], [0], [1], [0, 0, 1, 1], [], []>} : vector<24x32xbf16>, vector<32x128xbf16>, vector<24x128xf32> -> vector<24x128xf32>
    %c0_88 = arith.constant 0 : index
    %c0_89 = arith.constant 0 : index
    %c0_90 = arith.constant 0 : index
    %167 = vector.load %arg13[%c0_88, %c0_89, %c0_90] : memref<1x1x128xf32, #tpu.memory_space<vmem>>, vector<1x1x128xf32>
    %168 = vector.shape_cast %167 : vector<1x1x128xf32> to vector<1x128xf32>
    %169 = vector.broadcast %168 : vector<1x128xf32> to vector<24x128xf32>
    %170 = arith.addf %166, %169 : vector<24x128xf32>
    %cst_91 = arith.constant 5.000000e-01 : f32
    %171 = vector.broadcast %cst_91 : f32 to vector<24x128xf32>
    %172 = arith.mulf %171, %170 : vector<24x128xf32>
    %cst_92 = arith.constant 0.707106769 : f32
    %173 = vector.broadcast %cst_92 : f32 to vector<24x128xf32>
    %174 = arith.mulf %170, %173 : vector<24x128xf32>
    %cst_93 = arith.constant 0.000000e+00 : f32
    %175 = vector.broadcast %cst_93 : f32 to vector<24x128xf32>
    %176 = arith.cmpf oge, %174, %175 : vector<24x128xf32>
    %cst_94 = arith.constant 1.000000e+00 : f32
    %cst_95 = arith.constant -1.000000e+00 : f32
    %177 = vector.broadcast %cst_94 : f32 to vector<24x128xf32>
    %178 = vector.broadcast %cst_95 : f32 to vector<24x128xf32>
    %179 = arith.select %176, %177, %178 : vector<24x128xi1>, vector<24x128xf32>
    %180 = math.absf %174 : vector<24x128xf32>
    %cst_96 = arith.constant 0.327591091 : f32
    %181 = vector.broadcast %cst_96 : f32 to vector<24x128xf32>
    %182 = arith.mulf %181, %180 : vector<24x128xf32>
    %cst_97 = arith.constant 1.000000e+00 : f32
    %183 = vector.broadcast %cst_97 : f32 to vector<24x128xf32>
    %184 = arith.addf %183, %182 : vector<24x128xf32>
    %cst_98 = arith.constant 1.000000e+00 : f32
    %185 = vector.broadcast %cst_98 : f32 to vector<24x128xf32>
    %186 = arith.divf %185, %184 : vector<24x128xf32>
    %cst_99 = arith.constant 1.06140542 : f32
    %187 = vector.broadcast %cst_99 : f32 to vector<24x128xf32>
    %188 = arith.mulf %187, %186 : vector<24x128xf32>
    %cst_100 = arith.constant -1.45315206 : f32
    %189 = vector.broadcast %cst_100 : f32 to vector<24x128xf32>
    %190 = arith.addf %188, %189 : vector<24x128xf32>
    %191 = arith.mulf %190, %186 : vector<24x128xf32>
    %cst_101 = arith.constant 1.42141378 : f32
    %192 = vector.broadcast %cst_101 : f32 to vector<24x128xf32>
    %193 = arith.addf %191, %192 : vector<24x128xf32>
    %194 = arith.mulf %193, %186 : vector<24x128xf32>
    %cst_102 = arith.constant -0.284496725 : f32
    %195 = vector.broadcast %cst_102 : f32 to vector<24x128xf32>
    %196 = arith.addf %194, %195 : vector<24x128xf32>
    %197 = arith.mulf %196, %186 : vector<24x128xf32>
    %cst_103 = arith.constant 0.254829586 : f32
    %198 = vector.broadcast %cst_103 : f32 to vector<24x128xf32>
    %199 = arith.addf %197, %198 : vector<24x128xf32>
    %200 = arith.mulf %199, %186 : vector<24x128xf32>
    %cst_104 = arith.constant 0.000000e+00 : f32
    %201 = vector.broadcast %cst_104 : f32 to vector<24x128xf32>
    %202 = arith.subf %201, %180 : vector<24x128xf32>
    %203 = arith.mulf %202, %180 : vector<24x128xf32>
    %204 = math.exp %203 : vector<24x128xf32>
    %205 = arith.mulf %200, %204 : vector<24x128xf32>
    %cst_105 = arith.constant 1.000000e+00 : f32
    %206 = vector.broadcast %cst_105 : f32 to vector<24x128xf32>
    %207 = arith.subf %206, %205 : vector<24x128xf32>
    %208 = arith.mulf %179, %207 : vector<24x128xf32>
    %cst_106 = arith.constant 1.000000e+00 : f32
    %209 = vector.broadcast %cst_106 : f32 to vector<24x128xf32>
    %210 = arith.addf %209, %208 : vector<24x128xf32>
    %211 = arith.mulf %172, %210 : vector<24x128xf32>
    %c0_107 = arith.constant 0 : index
    %c0_108 = arith.constant 0 : index
    %c0_109 = arith.constant 0 : index
    %212 = vector.load %arg14[%c0_107, %c0_108, %c0_109] : memref<1x128x32xbf16, #tpu.memory_space<vmem>>, vector<1x128x32xbf16>
    %213 = vector.shape_cast %212 : vector<1x128x32xbf16> to vector<128x32xbf16>
    %214 = arith.truncf %211 : vector<24x128xf32> to vector<24x128xbf16>
    %cst_110 = arith.constant dense<0.000000e+00> : vector<24x32xf32>
    %215 = tpu.matmul %214, %213, %cst_110 {dimension_numbers = #tpu.dot_dimension_numbers<[1], [0], [0], [1], [0, 0, 1, 1], [], []>} : vector<24x128xbf16>, vector<128x32xbf16>, vector<24x32xf32> -> vector<24x32xf32>
    %c0_111 = arith.constant 0 : index
    %c0_112 = arith.constant 0 : index
    %c0_113 = arith.constant 0 : index
    %216 = vector.load %arg15[%c0_111, %c0_112, %c0_113] : memref<1x1x32xf32, #tpu.memory_space<vmem>>, vector<1x1x32xf32>
    %217 = vector.shape_cast %216 : vector<1x1x32xf32> to vector<1x32xf32>
    %218 = vector.broadcast %217 : vector<1x32xf32> to vector<24x32xf32>
    %219 = arith.addf %215, %218 : vector<24x32xf32>
    %220 = arith.addf %138, %219 : vector<24x32xf32>
    %c1_i32 = arith.constant 1 : i32
    %221 = arith.cmpi slt, %arg0, %c1_i32 : i32
    %222 = arith.extui %221 : i1 to i32
    %c0_i32_114 = arith.constant 0 : i32
    %223 = arith.cmpi ne, %222, %c0_i32_114 : i32
    scf.if %223 {
      %c0_117 = arith.constant 0 : index
      %c0_118 = arith.constant 0 : index
      %227 = vector.load %arg18[%c0_117, %c0_118] : memref<24x32xf32, #tpu.memory_space<vmem>>, vector<24x32xf32>
      tpu.vector_store %arg18[%c0_117, %c0_118], %220 {strides = array<i32>} : memref<24x32xf32, #tpu.memory_space<vmem>>, vector<24x32xf32>,
    } else {
    }
    %c1_i32_115 = arith.constant 1 : i32
    %224 = arith.cmpi eq, %arg0, %c1_i32_115 : i32
    %225 = arith.extui %224 : i1 to i32
    %c0_i32_116 = arith.constant 0 : i32
    %226 = arith.cmpi ne, %225, %c0_i32_116 : i32
    scf.if %226 {
      %c0_117 = arith.constant 0 : index
      %c0_118 = arith.constant 0 : index
      %227 = vector.load %arg16[%c0_117, %c0_118] : memref<1x32xf32, #tpu.memory_space<vmem>>, vector<1x32xf32>
      %c0_119 = arith.constant 0 : index
      %c0_120 = arith.constant 0 : index
      %228 = vector.load %arg17[%c0_119, %c0_120] : memref<1x32xf32, #tpu.memory_space<vmem>>, vector<1x32xf32>
      %cst_121 = arith.constant dense<0.000000e+00> : vector<24xf32>
      %229 = vector.multi_reduction <add>, %220, %cst_121 [1] : vector<24x32xf32> to vector<24xf32>
      %230 = vector.shape_cast %229 : vector<24xf32> to vector<24x1xf32>
      %cst_122 = arith.constant 3.200000e+01 : f32
      %231 = vector.broadcast %cst_122 : f32 to vector<24x1xf32>
      %232 = arith.divf %230, %231 : vector<24x1xf32>
      %233 = vector.broadcast %232 : vector<24x1xf32> to vector<24x32xf32>
      %234 = arith.subf %220, %233 : vector<24x32xf32>
      %235 = arith.mulf %234, %234 : vector<24x32xf32>
      %cst_123 = arith.constant dense<0.000000e+00> : vector<24xf32>
      %236 = vector.multi_reduction <add>, %235, %cst_123 [1] : vector<24x32xf32> to vector<24xf32>
      %237 = vector.shape_cast %236 : vector<24xf32> to vector<24x1xf32>
      %cst_124 = arith.constant 3.200000e+01 : f32
      %238 = vector.broadcast %cst_124 : f32 to vector<24x1xf32>
      %239 = arith.divf %237, %238 : vector<24x1xf32>
      %cst_125 = arith.constant 9.99999974E-6 : f32
      %240 = vector.broadcast %cst_125 : f32 to vector<24x1xf32>
      %241 = arith.addf %239, %240 : vector<24x1xf32>
      %242 = math.rsqrt %241 : vector<24x1xf32>
      %243 = vector.broadcast %242 : vector<24x1xf32> to vector<24x32xf32>
      %244 = arith.mulf %234, %243 : vector<24x32xf32>
      %245 = vector.broadcast %227 : vector<1x32xf32> to vector<24x32xf32>
      %246 = arith.mulf %244, %245 : vector<24x32xf32>
      %247 = vector.broadcast %228 : vector<1x32xf32> to vector<24x32xf32>
      %248 = arith.addf %246, %247 : vector<24x32xf32>
      %c0_126 = arith.constant 0 : index
      %c0_127 = arith.constant 0 : index
      %249 = vector.load %arg18[%c0_126, %c0_127] : memref<24x32xf32, #tpu.memory_space<vmem>>, vector<24x32xf32>
      tpu.vector_store %arg18[%c0_126, %c0_127], %248 {strides = array<i32>} : memref<24x32xf32, #tpu.memory_space<vmem>>, vector<24x32xf32>,
    } else {
    }
    return
  }
  func.func @transform_0(%arg0: i32) -> (i32, i32) {
    %c0_i32 = arith.constant 0 : i32
    %c0_i32_0 = arith.constant 0 : i32
    %c0_i32_1 = arith.constant 0 : i32
    return %c0_i32, %c0_i32_0 : i32, i32
  }
  func.func @transform_1(%arg0: i32) -> (i32, i32) {
    %c0_i32 = arith.constant 0 : i32
    %c0_i32_0 = arith.constant 0 : i32
    %c0_i32_1 = arith.constant 0 : i32
    return %c0_i32, %c0_i32_0 : i32, i32
  }
  func.func @transform_2(%arg0: i32) -> (i32, i32) {
    %c0_i32 = arith.constant 0 : i32
    %c0_i32_0 = arith.constant 0 : i32
    %c0_i32_1 = arith.constant 0 : i32
    return %c0_i32, %c0_i32_0 : i32, i32
  }
  func.func @transform_3(%arg0: i32) -> (i32, i32, i32) {
    %c0_i32 = arith.constant 0 : i32
    %c0_i32_0 = arith.constant 0 : i32
    %c0_i32_1 = arith.constant 0 : i32
    return %arg0, %c0_i32, %c0_i32_0 : i32, i32, i32
  }
  func.func @transform_4(%arg0: i32) -> (i32, i32, i32) {
    %c0_i32 = arith.constant 0 : i32
    %c0_i32_0 = arith.constant 0 : i32
    %c0_i32_1 = arith.constant 0 : i32
    return %arg0, %c0_i32, %c0_i32_0 : i32, i32, i32
  }
  func.func @transform_5(%arg0: i32) -> (i32, i32, i32) {
    %c0_i32 = arith.constant 0 : i32
    %c0_i32_0 = arith.constant 0 : i32
    %c0_i32_1 = arith.constant 0 : i32
    return %arg0, %c0_i32, %c0_i32_0 : i32, i32, i32
  }
  func.func @transform_6(%arg0: i32) -> (i32, i32, i32) {
    %c0_i32 = arith.constant 0 : i32
    %c0_i32_0 = arith.constant 0 : i32
    %c0_i32_1 = arith.constant 0 : i32
    return %arg0, %c0_i32, %c0_i32_0 : i32, i32, i32
  }
  func.func @transform_7(%arg0: i32) -> (i32, i32, i32) {
    %c0_i32 = arith.constant 0 : i32
    %c0_i32_0 = arith.constant 0 : i32
    %c0_i32_1 = arith.constant 0 : i32
    return %arg0, %c0_i32, %c0_i32_0 : i32, i32, i32
  }
  func.func @transform_8(%arg0: i32) -> (i32, i32, i32) {
    %c0_i32 = arith.constant 0 : i32
    %c0_i32_0 = arith.constant 0 : i32
    %c0_i32_1 = arith.constant 0 : i32
    return %arg0, %c0_i32, %c0_i32_0 : i32, i32, i32
  }
  func.func @transform_9(%arg0: i32) -> (i32, i32, i32) {
    %c0_i32 = arith.constant 0 : i32
    %c0_i32_0 = arith.constant 0 : i32
    %c0_i32_1 = arith.constant 0 : i32
    return %arg0, %c0_i32, %c0_i32_0 : i32, i32, i32
  }
  func.func @transform_10(%arg0: i32) -> (i32, i32, i32) {
    %c0_i32 = arith.constant 0 : i32
    %c0_i32_0 = arith.constant 0 : i32
    %c0_i32_1 = arith.constant 0 : i32
    return %arg0, %c0_i32, %c0_i32_0 : i32, i32, i32
  }
  func.func @transform_11(%arg0: i32) -> (i32, i32, i32) {
    %c0_i32 = arith.constant 0 : i32
    %c0_i32_0 = arith.constant 0 : i32
    %c0_i32_1 = arith.constant 0 : i32
    return %arg0, %c0_i32, %c0_i32_0 : i32, i32, i32
  }
  func.func @transform_12(%arg0: i32) -> (i32, i32, i32) {
    %c0_i32 = arith.constant 0 : i32
    %c0_i32_0 = arith.constant 0 : i32
    %c0_i32_1 = arith.constant 0 : i32
    return %arg0, %c0_i32, %c0_i32_0 : i32, i32, i32
  }
  func.func @transform_13(%arg0: i32) -> (i32, i32, i32) {
    %c0_i32 = arith.constant 0 : i32
    %c0_i32_0 = arith.constant 0 : i32
    %c0_i32_1 = arith.constant 0 : i32
    return %arg0, %c0_i32, %c0_i32_0 : i32, i32, i32
  }
  func.func @transform_14(%arg0: i32) -> (i32, i32, i32) {
    %c0_i32 = arith.constant 0 : i32
    %c0_i32_0 = arith.constant 0 : i32
    %c0_i32_1 = arith.constant 0 : i32
    return %arg0, %c0_i32, %c0_i32_0 : i32, i32, i32
  }
  func.func @transform_15(%arg0: i32) -> (i32, i32) {
    %c0_i32 = arith.constant 0 : i32
    %c0_i32_0 = arith.constant 0 : i32
    %c0_i32_1 = arith.constant 0 : i32
    return %c0_i32, %c0_i32_0 : i32, i32
  }
  func.func @transform_16(%arg0: i32) -> (i32, i32) {
    %c0_i32 = arith.constant 0 : i32
    %c0_i32_0 = arith.constant 0 : i32
    %c0_i32_1 = arith.constant 0 : i32
    return %c0_i32, %c0_i32_0 : i32, i32
  }
  func.func @transform_17(%arg0: i32) -> (i32, i32) {
    %c0_i32 = arith.constant 0 : i32
    %c0_i32_0 = arith.constant 0 : i32
    %c0_i32_1 = arith.constant 0 : i32
    return %c0_i32, %c0_i32_0 : i32, i32
  }
}

</mosaic_0001>

<bundles_post_ra>
// kernel: tpu_custom_call.1
= control target key start
LH: loop header
LB: loop body
LE: loop exit
PB: predicated region body
PF: predicated region fallthrough
CT: control target
= control target key end

     0   :  { %s3183_s0 = inlined_call_operand.vmem [shape: f32[24,32], index: 0, kind: input, shape index: {}]   ;;  %s3184_s1 = inlined_call_operand.vmem [shape: s32[24,1], index: 1, kind: input, shape index: {}]   ;;  %s3185_s2 = inlined_call_operand.vmem [shape: s32[1,24], index: 2, kind: input, shape index: {}]   ;;  %s3186_s3 = inlined_call_operand.vmem [shape: f32[2,1,32], index: 3, kind: input, shape index: {}]   ;;  %s3187_s4 = inlined_call_operand.vmem [shape: f32[2,1,32], index: 4, kind: input, shape index: {}]   ;;  %s3188_s5 = inlined_call_operand.vmem [shape: bf16[2,32,96], index: 5, kind: input, shape index: {}]   ;;  %s3189_s6 = inlined_call_operand.vmem [shape: f32[2,1,96], index: 6, kind: input, shape index: {}]   ;;  %s3190_s7 = inlined_call_operand.vmem [shape: bf16[2,32,32], index: 7, kind: input, shape index: {}]   ;;  %s3191_s8 = inlined_call_operand.vmem [shape: f32[2,1,32], index: 8, kind: input, shape index: {}]   ;;  %s3192_s9 = inlined_call_operand.vmem [shape: f32[2,1,32], index: 9, kind: input, shape index: {}]   ;;  %s3193_s10 = inlined_call_operand.vmem [shape: f32[2,1,32], index: 10, kind: input, shape index: {}]   ;;  %s3194_s11 = inlined_call_operand.vmem [shape: bf16[2,32,128], index: 11, kind: input, shape index: {}]   ;;  %s3195_s12 = inlined_call_operand.vmem [shape: f32[2,1,128], index: 12, kind: input, shape index: {}]   ;;  %s3196_s13 = inlined_call_operand.vmem [shape: bf16[2,128,32], index: 13, kind: input, shape index: {}]   ;;  %s3197_s14 = inlined_call_operand.vmem [shape: f32[2,1,32], index: 14, kind: input, shape index: {}]   ;;  %s3198_s15 = inlined_call_operand.vmem [shape: f32[1,32], index: 15, kind: input, shape index: {}]   ;;  %s3199_s16 = inlined_call_operand.vmem [shape: f32[1,32], index: 16, kind: input, shape index: {}]   ;;  %s3200_s17 = inlined_call_operand.hbm [shape: f32[24,32], index: 17, kind: output, shape index: {}]  }
   0x1   :  { %3205 = sst [smem:[#allocation9_spill]] %s3183_s0 }
   0x2   :  { %3206 = sst [smem:[#allocation10_spill]] %s3184_s1 }
   0x3   :  { %3207 = sst [smem:[#allocation11_spill]] %s3188_s5 }
   0x4   :  { %3208 = sst [smem:[#allocation12_spill]] %s3190_s7 }
   0x5   :  { %3209 = sst [smem:[#allocation13_spill]] %s3198_s15 }
   0x6   :  { %3210 = sst [smem:[#allocation14_spill]] %s3199_s16 }
   0x7   :  { %3211 = sst [smem:[#allocation15_spill]] %s3200_s17 }
   0x8   :  { %22 = vsyncpa [#allocation5], 0  ;;  %s2803_s24 = smov 0  }
   0x9 LB: > { %3212 = sst [smem:[#allocation7_spill]] %s2692_s24  ;;  %s2809_s25 = sadd.s32 4294967295, %s2692_s24   ;;  %s2692_s24 = sphi %s2803_s24, %s28_s24  }
   0xa   : > { %p2290_p0 = scmp.ge.s32.totalorder %s2692_s24, 1  ;;  %p577_p1 = scmp.lt.s32.totalorder %s2692_s24, 3 }
   0xc   : > { %p578_p2 = pnand %p2290_p0, %p577_p1 }
   0xe   : > { %581 = sbr.rel (%p578_p2) target bundleno = 4456 (0x1168), region = 88 }
  0x13   : > { %p663_p3 = scmp.lt.s32.totalorder %s2809_s25, 1  ;;  %s3213_s5 = sld [smem:[#allocation11_spill]] }
  0x14   : > { %s3214_s7 = sld [smem:[#allocation12_spill]]  ;;  %p2299_p4 = scmp.ne.s32.totalorder %s2809_s25, 0 }
  0x15   : > { %s2815_s26 = scalar_select %p663_p3, %s2809_s25, 1 }
  0x16   : > { %s3216_s22 = sld [smem:[#allocation9_spill]] (!%p2299_p4) }
  0x17   : > { %s2353_s19 = sshll.u32 %s2815_s26, 4  ;;  %s687_s15 = scalar_lea.vmem %s3192_s9, %s2815_s26 }
  0x18   : > { %s690_s21 = scalar_lea.vmem %s3193_s10, %s2815_s26  ;;  %s706_s1 = scalar_lea.vmem %s3197_s14, %s2815_s26 }
  0x19   : > { %s2833_s27 = scalar_lea.vmem %s3213_s5, %s2353_s19  ;;  %s2855_s5 = scalar_lea.vmem %s3194_s11, %s2353_s19 }
  0x1a   : > { %s2838_s17 = scalar_lea.vmem %s3214_s7, %s2353_s19  ;;  %s698_s7 = scalar_lea.vmem %s3195_s12, %s2815_s26 }
  0x1b   : > { %3215 = sst [smem:[#allocation8_spill]] %s2838_s17  ;;  %s2356_s17 = sshll.u32 %s2815_s26, 6 }
  0x1c   : > { %s2865_s0 = scalar_lea.vmem %s3196_s13, %s2356_s17  ;;  %711 = sbr.rel (%p2299_p4) target bundleno = 36 (0x24), region = 92 }
  0x21   : > { %v712_v0 = vld [vmem:[%s3216_s22] sm:$0xff]  ;;  %vm715_vm0 = vcmask 261120   ;;  %v713_v1 = vld [vmem:[%s3216_s22 + $0x8] sm:$0xff]  ;;  %v714_v2 = vld [vmem:[%s3216_s22 + $0x10] sm:$0xff] }
  0x22   : > { %716 = vst.msk [vmem:[#allocation4] sm:$0xff] %vm715_vm0, %v712_v0  ;;  %717 = vst.msk [vmem:[#allocation4 + $0x8] sm:$0xff] %vm715_vm0, %v713_v1 }
  0x23   : > { %718 = vst.msk [vmem:[#allocation4 + $0x10] sm:$0xff] %vm715_vm0, %v714_v2 }
  0x24 PF: > { %vm724_vm1 = vcmask 261120   ;;  %v2566_v24 = vld [vmem:[%s2833_s27 + $0x8] sm:$0xff]   ;;  %v2567_v25 = vld [vmem:[%s2833_s27] sm:$0xff]   ;;  %s3217_s29 = scalar_lea.vmem %s3186_s3, %s2815_s26  ;;  %s3218_s20 = scalar_lea.vmem %s3187_s4, %s2815_s26  ;;  %vm862_vm2 = vcmask 785408   ;;  %vm900_vm3 = vcmask 64512   ;;  %v2695_v1 = vmov 0  }
  0x25   : > { %2411 = vmatprep.subr.bf16.mxu0 %v2566_v24  ;;  %v2300_v37 = vld [vmem:[%s3217_s29] ss:$0 sm:$0xff]  ;;  %s3219_s24 = scalar_lea.vmem %s3189_s6, %s2815_s26  ;;  %s2694_s28 = smov 96   ;;  %2564 = vset.pattern.permute.xlu1 %v2695_v1  ;;  %vm961_vm7 = vcmask 195584   ;;  %vm1008_vm8 = vcmask 1043456   ;;  %vm1247_vm9 = vcmask 130112  }
  0x26   : > { %2412 = vmatpush3.bf16.msra.mxu0 %v2566_v24  ;;  %v2301_v43 = vld [vmem:[%s3218_s20] ss:$0 sm:$0xff]  ;;  %s3220_s27 = sld [smem:[#allocation10_spill]]  ;;  %2565 = vset.pattern.permute.xlu0 %v2695_v1  ;;  %s2699_s16 = smov 88   ;;  %vm1435_vm10 = vcmask 195712   ;;  %vm1623_vm11 = vcmask 261312  }
  0x27   : > { %2413 = vmatprep.subr.bf16.mxu0 %v2567_v25  ;;  %v2302_v51 = vld [vmem:[%s3219_s24] ss:$0 sm:$0xff]  ;;  %s2697_s24 = smov 64   ;;  %s2700_s17 = smov 56  }
  0x28   : > { %s2701_s29 = smov 80   ;;  %s2702_s18 = smov 112  }
  0x29   : > { %v2881_v3 = vld [vmem:[#allocation4] sm:$0xff]  ;;  %v2885_v5 = vld [vmem:[#allocation4 + $0x8] sm:$0xff]  ;;  %s2703_s30 = smov 48   ;;  %s2704_s20 = smov 72  }
  0x2a   : > { %v2883_v4 = vld [vmem:[#allocation4 + $0x10] sm:$0xff]  ;;  %v725_v6 = vsel %vm724_vm1, %v2881_v3, 0.0  ;;  %v728_v8 = vsel %vm724_vm1, %v2885_v5, 0.0  ;;  %2414 = vmatpush3.bf16.msra.mxu0 %v2567_v25  ;;  %s2705_s19 = smov 104   ;;  %s2706_s23 = smov 40  }
  0x2b   : > { %v731_v7 = vsel %vm724_vm1, %v2883_v4, 0.0  ;;  %726 = vadd.xlane.f32.xlu0 %v725_v6  ;;  %p2345_p5 = scmp.ge.s32.totalorder %s2809_s25, 1 }
  0x2c   : > { %732 = vadd.xlane.f32.xlu1 %v731_v7  ;;  %v868_v63 = vld [vmem:[%s3220_s27 + $0x10] sm:$0xff]  ;;  %v866_v2 = vld [vmem:[%s3220_s27] sm:$0xff]  ;;  %v867_v6 = vld [vmem:[%s3220_s27 + $0x8] sm:$0xff] }
  0x2f   : > { %729 = vadd.xlane.f32.xlu0 %v728_v8 }
  0xb4   : > { %v727_v9 = vpop.xlane.xlu0 %726 }
  0xb5   : > { %v733_v10 = vpop.xlane.xlu1 %732  ;;  %v735_v11 = vmul.f32 0.03125, %v727_v9 }
  0xb6   : > { %v737_v12 = vmul.f32 0.03125, %v733_v10 }
  0xb7   : > { %v738_v13 = vsub.f32 %v2881_v3, %v735_v11 }
  0xb8   : > { %v740_v14 = vsub.f32 %v2883_v4, %v737_v12  ;;  %v730_v15 = vpop.xlane.xlu0 %729  ;;  %v2307_v12 = vld [vmem:[%s3185_s2] ss:$0 sm:$0xff] }
  0xb9   : > { %v736_v16 = vmul.f32 0.03125, %v730_v15  ;;  %v741_v17 = vmul.f32 %v738_v13, %v738_v13 }
  0xba   : > { %v743_v18 = vmul.f32 %v740_v14, %v740_v14 }
  0xbb   : > { %v739_v19 = vsub.f32 %v2885_v5, %v736_v16  ;;  %v744_v20 = vsel %vm724_vm1, %v741_v17, 0.0 }
  0xbc   : > { %745 = vadd.xlane.f32.xlu1 %v744_v20  ;;  %v750_v21 = vsel %vm724_vm1, %v743_v18, 0.0 }
  0xbd   : > { %v742_v22 = vmul.f32 %v739_v19, %v739_v19 }
  0xbf   : > { %v747_v23 = vsel %vm724_vm1, %v742_v22, 0.0 }
  0xc0   : > { %751 = vadd.xlane.f32.xlu1 %v750_v21  ;;  %748 = vadd.xlane.f32.xlu0 %v747_v23 }
 0x145   : > { %v746_v26 = vpop.xlane.xlu1 %745 }
 0x146   : > { %v753_v27 = vmul.f32 0.03125, %v746_v26 }
 0x148   : > { %v756_v28 = vadd.f32 1e-05, %v753_v27 }
 0x149   : > { %v752_v29 = vpop.xlane.xlu1 %751  ;;  %v749_v30 = vpop.xlane.xlu0 %748 }
 0x14a   : > { %2580 = vrsqrt.f32 %v756_v28  ;;  %v755_v31 = vmul.f32 0.03125, %v752_v29  ;;  %v754_v32 = vmul.f32 0.03125, %v749_v30 }
 0x14c   : > { %v758_v33 = vadd.f32 1e-05, %v755_v31  ;;  %v757_v34 = vadd.f32 1e-05, %v754_v32 }
 0x14e   : > { %2582 = vrsqrt.f32 %v758_v33 }
 0x14f   : > { %2584 = vrsqrt.f32 %v757_v34 }
 0x157   : > { %v2581_v35 = vpop.eup %2580 }
 0x158   : > { %v762_v36 = vmul.f32 %v2581_v35, %v738_v13 }
 0x15a   : > { %v771_v42 = vmul.f32 %v2300_v37, %v762_v36 }
 0x15b   : > { %v2583_v38 = vpop.eup %2582 }
 0x15c   : > { %v2585_v39 = vpop.eup %2584  ;;  %v764_v40 = vmul.f32 %v2583_v38, %v740_v14  ;;  %v780_v47 = vadd.f32 %v2301_v43, %v771_v42  ;;  %v2696_v14 = vmov -1e+30  }
 0x15d   : > { %v763_v41 = vmul.f32 %v2585_v39, %v739_v19 }
 0x15e   : > { %v773_v44 = vmul.f32 %v2300_v37, %v764_v40 }
 0x15f   : > { %v772_v45 = vmul.f32 %v2300_v37, %v763_v41 }
 0x160   : > { %v782_v46 = vadd.f32 %v2301_v43, %v773_v44 }
 0x161   : > { %v781_v48 = vadd.f32 %v2301_v43, %v772_v45 }
 0x162   : > { %v788_v49 = vpack.c.bf16 %v782_v46, %v782_v46 }
 0x163   : > { %v787_v50 = vpack.c.bf16 %v781_v48, %v780_v47 }
 0x165   : > { %2415 = vmatprep.mubr.msk.bf16.mxu0 %vm724_vm1, %v787_v50 }
 0x166   : > { %2416 = vmatmul.mubr.msk.bf16.vlgmr.msra.gmra.mxu0 %vm724_vm1, %v788_v49 }
 0x226   : > { %v2417_v52 = vpop.f32.mrf.mxu0 }
 0x227   : > { %v857_v53 = vadd.f32 %v2417_v52, %v2302_v51 }
 0x228   : > { %v848_v54 = vpop.f32.mrf.mxu0 }
 0x229   : > { %865 = vst.msk [vmem:[#allocation2 + $0x10] sm:$0xff] %vm862_vm2, %v857_v53  ;;  %v849_v55 = vadd.f32 %v2302_v51, %v848_v54 }
 0x22a   : > { %v2418_v56 = vpop.f32.mrf.mxu0 }
 0x22b   : > { %863 = vst.msk [vmem:[#allocation2] sm:$0xff] %vm862_vm2, %v849_v55 }
 0x22c   : > { %v851_v57 = vpop.f32.mrf.mxu0 }
 0x22d   : > { %v852_v58 = vadd.f32 %v2302_v51, %v851_v57 }
 0x22f   : > { %864 = vst.msk [vmem:[#allocation2 + $0x8] sm:$0xff] %vm862_vm2, %v852_v58 }
 0x230   : > { %v891_v59 = vld [vmem:[#allocation2 + $0x10] sm:$0xff] }
 0x231   : > { %v2918_v60 = vpack.c.bf16 %v891_v59, %v891_v59 }
 0x232   : > { %v889_v61 = vld [vmem:[#allocation2] sm:$0xff] }
 0x233   : > { %898 = vrot.lane.b32.xlu0 %v2918_v60, %s2694_s28 }
 0x236   : > { %v890_v62 = vld [vmem:[#allocation2 + $0x8] sm:$0xff] }
 0x237   : > { %v2924_v0 = vpack.c.bf16 %v890_v62, %v889_v61  ;;  %877 = vperm.xlu0 %2565, %v868_v63  }
 0x239   : > { %896 = vrot.lane.b32.xlu1 %v2924_v0, %s2694_s28  ;;  %2423 = vmatprep.mubr.msk.bf16.mxu0 %vm900_vm3, %v2924_v0  ;;  %s2698_s28 = smov 120  }
 0x23d   : > { %871 = vperm.xlu1 %2564, %v866_v2  }
 0x241   : > { %874 = vperm.xlu1 %2564, %v867_v6  }
 0x2a5   : > { %v899_v7 = vpop.permute.xlu0 %898 }
 0x2a6   : > { %v911_v8 = vsel %vm900_vm3, %v899_v7, 0  ;;  %2519 = vmatprep.subr.msk.bf16.mxu0 %vm900_vm3, %v899_v7 }
 0x2a7   : > { %2420 = vmatpush3.bf16.xpose.msra.mxu0 %v911_v8 }
 0x2ab   : > { %v897_v9 = vpop.permute.xlu1 %896 }
 0x2ac   : > { %2520 = vmatprep.subr.msk.bf16.mxu0 %vm900_vm3, %v897_v9  ;;  %v908_v10 = vsel %vm900_vm3, %v897_v9, 0 }
 0x2af   : > { %2422 = vmatpush3.bf16.xpose.msra.mxu0 %v908_v10 }
 0x2b2   : > { %v878_v13 = vpop.permute.xlu0 %877 }
 0x2b3   : > { %vm885_vm5 = vcmp.eq.s32.totalorder %v878_v13, %v2307_v12 }
 0x2b4   : > { %v2948_v22 = vsel %vm885_vm5, 0.0, %v2696_v14 }
 0x2b6   : > { %2424 = vmatmul.mubr.msk.bf16.vlgmr.msra.gmra.mxu0 %vm900_vm3, %v2918_v60 }
 0x2b8   : > { %v872_v11 = vpop.permute.xlu1 %871 }
 0x2b9   : > { %vm883_vm4 = vcmp.eq.s32.totalorder %v872_v11, %v2307_v12 }
 0x2ba   : > { %v2944_v15 = vsel %vm883_vm4, 0.0, %v2696_v14 }
 0x2bc   : > { %v875_v16 = vpop.permute.xlu1 %874 }
 0x2bd   : > { %vm884_vm6 = vcmp.eq.s32.totalorder %v875_v16, %v2307_v12 }
 0x2be   : > { %v2950_v23 = vsel %vm884_vm6, 0.0, %v2696_v14 }
 0x376   : > { %v2425_v17 = vpop.f32.mrf.mxu0 }
 0x377   : > { %v956_v26 = vadd.f32 %v2425_v17, %v2948_v22 }
 0x378   : > { %v947_v18 = vpop.f32.mrf.mxu0 }
 0x379   : > { %v948_v19 = vadd.f32 %v947_v18, %v2944_v15  ;;  %v968_v28 = vsel %vm961_vm7, %v956_v26, -inf }
 0x37a   : > { %v2426_v20 = vpop.f32.mrf.mxu0 }
 0x37b   : > { %v962_v21 = vsel %vm961_vm7, %v948_v19, -inf }
 0x37c   : > { %v950_v24 = vpop.f32.mrf.mxu0  ;;  %963 = vmax.xlane.f32.xlu1 %v962_v21 }
 0x37d   : > { %v951_v25 = vadd.f32 %v950_v24, %v2950_v23 }
 0x37f   : > { %v965_v27 = vsel %vm961_vm7, %v951_v25, -inf }
 0x380   : > { %966 = vmax.xlane.f32.xlu0 %v965_v27 }
 0x384   : > { %969 = vmax.xlane.f32.xlu0 %v968_v28 }
 0x405   : > { %v964_v29 = vpop.xlane.xlu1 %963 }
 0x406   : > { %v971_v32 = vsub.f32 %v948_v19, %v964_v29 }
 0x408   : > { %v974_v36 = vmul.f32 1.442695, %v971_v32 }
 0x409   : > { %v967_v30 = vpop.xlane.xlu0 %966 }
 0x40a   : > { %v972_v31 = vsub.f32 %v951_v25, %v967_v30 }
 0x40c   : > { %v976_v33 = vmul.f32 1.442695, %v972_v31 }
 0x40d   : > { %v970_v34 = vpop.xlane.xlu0 %969 }
 0x40e   : > { %2586 = vpow2.f32 %v976_v33  ;;  %v973_v35 = vsub.f32 %v956_v26, %v970_v34 }
 0x410   : > { %v978_v37 = vmul.f32 1.442695, %v973_v35 }
 0x412   : > { %2588 = vpow2.f32 %v978_v37 }
 0x413   : > { %2590 = vpow2.f32 %v974_v36 }
 0x41b   : > { %v2587_v38 = vpop.eup %2586 }
 0x41c   : > { %v983_v39 = vsel %vm961_vm7, %v2587_v38, 0.0 }
 0x41d   : > { %984 = vadd.xlane.f32.xlu0 %v983_v39 }
 0x41f   : > { %v2589_v40 = vpop.eup %2588 }
 0x420   : > { %v986_v41 = vsel %vm961_vm7, %v2589_v40, 0.0  ;;  %v2591_v42 = vpop.eup %2590 }
 0x421   : > { %987 = vadd.xlane.f32.xlu1 %v986_v41  ;;  %v980_v43 = vsel %vm961_vm7, %v2591_v42, 0.0 }
 0x425   : > { %981 = vadd.xlane.f32.xlu1 %v980_v43 }
 0x433   : > { %999 = vrot.lane.b32.xlu0 %v2918_v60, %s2697_s24 }
 0x436   : > { %997 = vrot.lane.b32.xlu1 %v2924_v0, %s2697_s24  ;;  %s2707_s24 = smov 8  }
 0x437   : > { %1070 = vrot.lane.b32.xlu0 %v2924_v0, %s2698_s28 }
 0x43a   : > { %1076 = vrot.lane.b32.xlu1 %v2918_v60, %s2699_s16 }
 0x43e   : > { %1074 = vrot.lane.b32.xlu1 %v2924_v0, %s2699_s16  ;;  %s3221_s16 = sld [smem:[#allocation8_spill]] }
 0x442   : > { %1072 = vrot.lane.b32.xlu1 %v2918_v60, %s2698_s28  ;;  %s2708_s28 = smov 16  }
 0x4a6   : > { %v985_v44 = vpop.xlane.xlu0 %984 }
 0x4aa   : > { %v1000_v45 = vpop.permute.xlu0 %999  ;;  %v988_v46 = vpop.xlane.xlu1 %987 }
 0x4ab   : > { %v1010_v47 = vsel %vm1008_vm8, %v1000_v45, 0  ;;  %2521 = vmatprep.subr.msk.bf16.mxu0 %vm1008_vm8, %v1000_v45  ;;  %2592 = vrcp.f32 %v988_v46 }
 0x4ac   : > { %2428 = vmatpush3.bf16.msra.mxu0 %v1010_v47  ;;  %2594 = vrcp.f32 %v985_v44 }
 0x4ae   : > { %v982_v48 = vpop.xlane.xlu1 %981  ;;  %v1071_v59 = vpop.permute.xlu0 %1070 }
 0x4af   : > { %2596 = vrcp.f32 %v982_v48 }
 0x4b2   : > { %v998_v49 = vpop.permute.xlu1 %997 }
 0x4b3   : > { %2429 = vmatprep.subr.bf16.mxu0 %v998_v49 }
 0x4b4   : > { %2430 = vmatpush3.bf16.msra.mxu0 %v998_v49 }
 0x4b6   : > { %v1077_v50 = vpop.permute.xlu1 %1076 }
 0x4b7   : > { %2522 = vmatprep.subr.msk.bf16.mxu0 %vm900_vm3, %v1077_v50  ;;  %v1088_v61 = vsel %vm900_vm3, %v1077_v50, 0 }
 0x4b8   : > { %v2593_v51 = vpop.eup %2592 }
 0x4b9   : > { %v2595_v52 = vpop.eup %2594  ;;  %v994_v54 = vmul.f32 %v2593_v51, %v2589_v40 }
 0x4ba   : > { %v993_v56 = vmul.f32 %v2595_v52, %v2587_v38  ;;  %v1075_v62 = vpop.permute.xlu1 %1074 }
 0x4bb   : > { %v996_v58 = vpack.c.bf16 %v994_v54, %v994_v54  ;;  %v1085_v63 = vsel %vm900_vm3, %v1075_v62, 0 }
 0x4bc   : > { %v2597_v53 = vpop.eup %2596 }
 0x4bd   : > { %v992_v55 = vmul.f32 %v2597_v53, %v2591_v42 }
 0x4be   : > { %v1073_v1 = vpop.permute.xlu1 %1072 }
 0x4bf   : > { %v995_v57 = vpack.c.bf16 %v993_v56, %v992_v55 }
 0x4c1   : > { %2431 = vmatprep.mubr.msk.bf16.mxu0 %vm961_vm7, %v995_v57 }
 0x4c2   : > { %2432 = vmatmul.mubr.msk.bf16.vlgmr.msra.gmra.mxu0 %vm961_vm7, %v996_v58 }
 0x4c3   : > { %2436 = vmatpush3.bf16.xpose.msra.mxu0 %v1088_v61  ;;  %2439 = vmatprep.mubr.msk.bf16.mxu0 %vm900_vm3, %v1071_v59 }
 0x4c4   : > { %2523 = vmatprep.subr.msk.bf16.mxu0 %vm900_vm3, %v1075_v62 }
 0x4cb   : > { %2438 = vmatpush3.bf16.xpose.msra.mxu0 %v1085_v63 }
 0x4d2   : > { %2440 = vmatmul.mubr.msk.bf16.vlgmr.msra.gmra.mxu0 %vm900_vm3, %v1073_v1 }
 0x582   : > { %v2433_v2 = vpop.f32.mrf.mxu0 }
 0x583   : > { %1062 = vst.msk [vmem:[#allocation3 + $0x10] sm:$0xff] %vm900_vm3, %v2433_v2 }
 0x584   : > { %v1046_v6 = vpop.f32.mrf.mxu0 }
 0x585   : > { %1060 = vst.msk [vmem:[#allocation3] sm:$0xff] %vm900_vm3, %v1046_v6 }
 0x586   : > { %v2434_v7 = vpop.f32.mrf.mxu0 }
 0x588   : > { %v1049_v8 = vpop.f32.mrf.mxu0 }
 0x589   : > { %1061 = vst.msk [vmem:[#allocation3 + $0x8] sm:$0xff] %vm900_vm3, %v1049_v8 }
 0x592   : > { %v2441_v9 = vpop.f32.mrf.mxu0 }
 0x593   : > { %v1133_v13 = vadd.f32 %v2441_v9, %v2948_v22 }
 0x594   : > { %v1124_v10 = vpop.f32.mrf.mxu0 }
 0x595   : > { %v1125_v11 = vadd.f32 %v1124_v10, %v2944_v15  ;;  %v1144_v19 = vsel %vm961_vm7, %v1133_v13, -inf }
 0x596   : > { %v2442_v12 = vpop.f32.mrf.mxu0 }
 0x597   : > { %v1138_v14 = vsel %vm961_vm7, %v1125_v11, -inf }
 0x598   : > { %v1127_v16 = vpop.f32.mrf.mxu0  ;;  %1139 = vmax.xlane.f32.xlu0 %v1138_v14 }
 0x599   : > { %v1128_v17 = vadd.f32 %v1127_v16, %v2950_v23 }
 0x59b   : > { %v1141_v18 = vsel %vm961_vm7, %v1128_v17, -inf }
 0x59c   : > { %1142 = vmax.xlane.f32.xlu1 %v1141_v18  ;;  %1145 = vmax.xlane.f32.xlu0 %v1144_v19 }
 0x621   : > { %v1140_v20 = vpop.xlane.xlu0 %1139 }
 0x622   : > { %v1147_v21 = vsub.f32 %v1125_v11, %v1140_v20 }
 0x624   : > { %v1150_v24 = vmul.f32 1.442695, %v1147_v21 }
 0x625   : > { %v1143_v25 = vpop.xlane.xlu1 %1142  ;;  %v1146_v26 = vpop.xlane.xlu0 %1145 }
 0x626   : > { %2598 = vpow2.f32 %v1150_v24  ;;  %v1148_v27 = vsub.f32 %v1128_v17, %v1143_v25  ;;  %v1149_v28 = vsub.f32 %v1133_v13, %v1146_v26 }
 0x628   : > { %v1152_v29 = vmul.f32 1.442695, %v1148_v27  ;;  %v1154_v30 = vmul.f32 1.442695, %v1149_v28 }
 0x62a   : > { %2600 = vpow2.f32 %v1152_v29 }
 0x62b   : > { %2602 = vpow2.f32 %v1154_v30 }
 0x633   : > { %v2599_v31 = vpop.eup %2598 }
 0x634   : > { %v1156_v32 = vsel %vm961_vm7, %v2599_v31, 0.0 }
 0x635   : > { %1157 = vadd.xlane.f32.xlu0 %v1156_v32 }
 0x637   : > { %v2601_v33 = vpop.eup %2600 }
 0x638   : > { %v2603_v34 = vpop.eup %2602  ;;  %v1159_v35 = vsel %vm961_vm7, %v2601_v33, 0.0 }
 0x639   : > { %1160 = vadd.xlane.f32.xlu0 %v1159_v35  ;;  %v1162_v36 = vsel %vm961_vm7, %v2603_v34, 0.0 }
 0x63a   : > { %1163 = vadd.xlane.f32.xlu1 %v1162_v36 }
 0x64b   : > { %1173 = vrot.lane.b32.xlu1 %v2924_v0, %s2700_s17 }
 0x64f   : > { %1264 = vrot.lane.b32.xlu1 %v2918_v60, %s2701_s29  ;;  %1175 = vrot.lane.b32.xlu0 %v2918_v60, %s2700_s17  ;;  %s2709_s17 = smov 24  }
 0x653   : > { %1262 = vrot.lane.b32.xlu1 %v2924_v0, %s2701_s29  ;;  %1258 = vrot.lane.b32.xlu0 %v2924_v0, %s2702_s18 }
 0x657   : > { %1260 = vrot.lane.b32.xlu1 %v2918_v60, %s2702_s18 }
 0x6be   : > { %v1158_v37 = vpop.xlane.xlu0 %1157 }
 0x6bf   : > { %2604 = vrcp.f32 %v1158_v37 }
 0x6c2   : > { %v1161_v38 = vpop.xlane.xlu0 %1160 }
 0x6c3   : > { %v1164_v39 = vpop.xlane.xlu1 %1163  ;;  %2606 = vrcp.f32 %v1161_v38 }
 0x6c4   : > { %2608 = vrcp.f32 %v1164_v39 }
 0x6c6   : > { %v1176_v40 = vpop.permute.xlu0 %1175 }
 0x6c7   : > { %v1174_v41 = vpop.permute.xlu1 %1173  ;;  %2524 = vmatprep.subr.msk.bf16.mxu1 %vm1008_vm8, %v1176_v40  ;;  %v1185_v42 = vsel %vm1008_vm8, %v1176_v40, 0 }
 0x6c8   : > { %2444 = vmatpush3.bf16.msra.mxu1 %v1185_v42 }
 0x6c9   : > { %2445 = vmatprep.subr.bf16.mxu1 %v1174_v41 }
 0x6ca   : > { %v1259_v53 = vpop.permute.xlu0 %1258 }
 0x6cb   : > { %v1265_v43 = vpop.permute.xlu1 %1264 }
 0x6cc   : > { %2446 = vmatpush3.bf16.msra.mxu1 %v1174_v41  ;;  %v2605_v44 = vpop.eup %2604  ;;  %v1276_v52 = vsel %vm900_vm3, %v1265_v43, 0 }
 0x6cd   : > { %2525 = vmatprep.subr.msk.bf16.mxu1 %vm900_vm3, %v1265_v43  ;;  %v1168_v47 = vmul.f32 %v2605_v44, %v2599_v31 }
 0x6cf   : > { %v1263_v54 = vpop.permute.xlu1 %1262 }
 0x6d0   : > { %v2607_v45 = vpop.eup %2606  ;;  %v1273_v55 = vsel %vm900_vm3, %v1263_v54, 0 }
 0x6d1   : > { %v2609_v46 = vpop.eup %2608  ;;  %v1169_v48 = vmul.f32 %v2607_v45, %v2601_v33 }
 0x6d2   : > { %v1170_v49 = vmul.f32 %v2609_v46, %v2603_v34 }
 0x6d3   : > { %v1171_v50 = vpack.c.bf16 %v1169_v48, %v1168_v47  ;;  %v1261_v56 = vpop.permute.xlu1 %1260 }
 0x6d4   : > { %v1172_v51 = vpack.c.bf16 %v1170_v49, %v1170_v49 }
 0x6d5   : > { %2447 = vmatprep.mubr.msk.bf16.mxu1 %vm961_vm7, %v1171_v50 }
 0x6d6   : > { %2448 = vmatmul.mubr.msk.bf16.vlgmr.msra.gmra.mxu1 %vm961_vm7, %v1172_v51 }
 0x6d7   : > { %2452 = vmatpush3.bf16.xpose.msra.mxu1 %v1276_v52  ;;  %2455 = vmatprep.mubr.msk.bf16.mxu1 %vm900_vm3, %v1259_v53 }
 0x6d8   : > { %2526 = vmatprep.subr.msk.bf16.mxu1 %vm900_vm3, %v1263_v54 }
 0x6df   : > { %2454 = vmatpush3.bf16.xpose.msra.mxu1 %v1273_v55 }
 0x6e6   : > { %2456 = vmatmul.mubr.msk.bf16.vlgmr.msra.gmra.mxu1 %vm900_vm3, %v1261_v56 }
 0x796   : > { %v3003_v57 = vpop.f32.mrf.mxu1 }
 0x798   : > { %v3005_v58 = vpop.f32.mrf.mxu1 }
 0x79a   : > { %v2450_v59 = vpop.f32.mrf.mxu1 }
 0x79c   : > { %v3007_v61 = vpop.f32.mrf.mxu1 }
 0x7a6   : > { %v2457_v62 = vpop.f32.mrf.mxu1 }
 0x7a7   : > { %v1321_v6 = vadd.f32 %v2457_v62, %v2948_v22 }
 0x7a8   : > { %v1312_v63 = vpop.f32.mrf.mxu1 }
 0x7a9   : > { %v1313_v1 = vadd.f32 %v1312_v63, %v2944_v15  ;;  %v1332_v11 = vsel %vm961_vm7, %v1321_v6, -inf }
 0x7aa   : > { %v2458_v2 = vpop.f32.mrf.mxu1 }
 0x7ab   : > { %v1326_v7 = vsel %vm961_vm7, %v1313_v1, -inf }
 0x7ac   : > { %v1315_v8 = vpop.f32.mrf.mxu1  ;;  %1327 = vmax.xlane.f32.xlu0 %v1326_v7 }
 0x7ad   : > { %v1316_v9 = vadd.f32 %v1315_v8, %v2950_v23 }
 0x7af   : > { %v1329_v10 = vsel %vm961_vm7, %v1316_v9, -inf }
 0x7b0   : > { %1330 = vmax.xlane.f32.xlu1 %v1329_v10  ;;  %1333 = vmax.xlane.f32.xlu0 %v1332_v11 }
 0x835   : > { %v1328_v12 = vpop.xlane.xlu0 %1327 }
 0x836   : > { %v1335_v13 = vsub.f32 %v1313_v1, %v1328_v12 }
 0x838   : > { %v1338_v14 = vmul.f32 1.442695, %v1335_v13 }
 0x839   : > { %v1331_v16 = vpop.xlane.xlu1 %1330  ;;  %v1334_v17 = vpop.xlane.xlu0 %1333 }
 0x83a   : > { %2610 = vpow2.f32 %v1338_v14  ;;  %v1336_v18 = vsub.f32 %v1316_v9, %v1331_v16  ;;  %v1337_v19 = vsub.f32 %v1321_v6, %v1334_v17 }
 0x83c   : > { %v1340_v20 = vmul.f32 1.442695, %v1336_v18  ;;  %v1342_v21 = vmul.f32 1.442695, %v1337_v19 }
 0x83e   : > { %2612 = vpow2.f32 %v1340_v20 }
 0x83f   : > { %2614 = vpow2.f32 %v1342_v21 }
 0x847   : > { %v2611_v24 = vpop.eup %2610 }
 0x848   : > { %v1344_v25 = vsel %vm961_vm7, %v2611_v24, 0.0 }
 0x849   : > { %1345 = vadd.xlane.f32.xlu0 %v1344_v25 }
 0x84b   : > { %v2613_v26 = vpop.eup %2612 }
 0x84c   : > { %v2615_v27 = vpop.eup %2614  ;;  %v1347_v28 = vsel %vm961_vm7, %v2613_v26, 0.0 }
 0x84d   : > { %1348 = vadd.xlane.f32.xlu0 %v1347_v28  ;;  %v1350_v29 = vsel %vm961_vm7, %v2615_v27, 0.0 }
 0x84e   : > { %1351 = vadd.xlane.f32.xlu1 %v1350_v29 }
 0x85f   : > { %1361 = vrot.lane.b32.xlu1 %v2924_v0, %s2703_s30 }
 0x863   : > { %1452 = vrot.lane.b32.xlu1 %v2918_v60, %s2704_s20  ;;  %1363 = vrot.lane.b32.xlu0 %v2918_v60, %s2703_s30  ;;  %s3222_s30 = scalar_lea.vmem %s3191_s8, %s2815_s26 }
 0x867   : > { %1450 = vrot.lane.b32.xlu1 %v2924_v0, %s2704_s20  ;;  %1446 = vrot.lane.b32.xlu0 %v2924_v0, %s2705_s19 }
 0x86b   : > { %1448 = vrot.lane.b32.xlu1 %v2918_v60, %s2705_s19 }
 0x8d2   : > { %v1346_v30 = vpop.xlane.xlu0 %1345 }
 0x8d3   : > { %2616 = vrcp.f32 %v1346_v30 }
 0x8d6   : > { %v1349_v31 = vpop.xlane.xlu0 %1348 }
 0x8d7   : > { %v1352_v32 = vpop.xlane.xlu1 %1351  ;;  %2618 = vrcp.f32 %v1349_v31 }
 0x8d8   : > { %2620 = vrcp.f32 %v1352_v32 }
 0x8da   : > { %v1364_v33 = vpop.permute.xlu0 %1363 }
 0x8db   : > { %v1362_v34 = vpop.permute.xlu1 %1361  ;;  %v1373_v35 = vsel %vm1008_vm8, %v1364_v33, 0  ;;  %2527 = vmatprep.subr.msk.bf16.mxu0 %vm1008_vm8, %v1364_v33 }
 0x8dc   : > { %2460 = vmatpush3.bf16.msra.mxu0 %v1373_v35 }
 0x8dd   : > { %2461 = vmatprep.subr.bf16.mxu0 %v1362_v34 }
 0x8de   : > { %v1447_v46 = vpop.permute.xlu0 %1446 }
 0x8df   : > { %v1453_v36 = vpop.permute.xlu1 %1452 }
 0x8e0   : > { %2462 = vmatpush3.bf16.msra.mxu0 %v1362_v34  ;;  %v2617_v37 = vpop.eup %2616  ;;  %v1464_v45 = vsel %vm900_vm3, %v1453_v36, 0 }
 0x8e1   : > { %2528 = vmatprep.subr.msk.bf16.mxu0 %vm900_vm3, %v1453_v36  ;;  %v1356_v40 = vmul.f32 %v2617_v37, %v2611_v24 }
 0x8e3   : > { %v1451_v47 = vpop.permute.xlu1 %1450 }
 0x8e4   : > { %v2619_v38 = vpop.eup %2618  ;;  %v1461_v48 = vsel %vm900_vm3, %v1451_v47, 0 }
 0x8e5   : > { %v2621_v39 = vpop.eup %2620  ;;  %v1357_v41 = vmul.f32 %v2619_v38, %v2613_v26  ;;  %v2568_v38 = vld [vmem:[%s3221_s16 + $0x8] sm:$0xff]  }
 0x8e6   : > { %v1358_v42 = vmul.f32 %v2621_v39, %v2615_v27  ;;  %v2569_v39 = vld [vmem:[%s3221_s16] sm:$0xff]  }
 0x8e7   : > { %v1359_v43 = vpack.c.bf16 %v1357_v41, %v1356_v40  ;;  %v1449_v49 = vpop.permute.xlu1 %1448 }
 0x8e8   : > { %v1360_v44 = vpack.c.bf16 %v1358_v42, %v1358_v42 }
 0x8e9   : > { %2463 = vmatprep.mubr.msk.bf16.mxu0 %vm961_vm7, %v1359_v43 }
 0x8ea   : > { %2464 = vmatmul.mubr.msk.bf16.vlgmr.msra.gmra.mxu0 %vm961_vm7, %v1360_v44 }
 0x8eb   : > { %2468 = vmatpush3.bf16.xpose.msra.mxu0 %v1464_v45  ;;  %2471 = vmatprep.mubr.msk.bf16.mxu0 %vm900_vm3, %v1447_v46 }
 0x8ec   : > { %2529 = vmatprep.subr.msk.bf16.mxu0 %vm900_vm3, %v1451_v47 }
 0x8f3   : > { %2470 = vmatpush3.bf16.xpose.msra.mxu0 %v1461_v48 }
 0x8fa   : > { %2472 = vmatmul.mubr.msk.bf16.vlgmr.msra.gmra.mxu0 %vm900_vm3, %v1449_v49 }
 0x9aa   : > { %v2465_v50 = vpop.f32.mrf.mxu0 }
 0x9ac   : > { %v1409_v51 = vpop.f32.mrf.mxu0 }
 0x9ae   : > { %v2466_v52 = vpop.f32.mrf.mxu0 }
 0x9b0   : > { %v1412_v53 = vpop.f32.mrf.mxu0 }
 0x9ba   : > { %v2473_v54 = vpop.f32.mrf.mxu0 }
 0x9bb   : > { %v1509_v62 = vadd.f32 %v2473_v54, %v2948_v22 }
 0x9bc   : > { %v1500_v55 = vpop.f32.mrf.mxu0 }
 0x9bd   : > { %v1501_v56 = vadd.f32 %v1500_v55, %v2944_v15  ;;  %v1520_v7 = vsel %vm961_vm7, %v1509_v62, -inf  ;;  %v2328_v55 = vld [vmem:[%s3222_s30] ss:$0 sm:$0xff] }
 0x9be   : > { %v2474_v59 = vpop.f32.mrf.mxu0 }
 0x9bf   : > { %v1514_v63 = vsel %vm961_vm7, %v1501_v56, -inf }
 0x9c0   : > { %v1503_v1 = vpop.f32.mrf.mxu0  ;;  %1515 = vmax.xlane.f32.xlu0 %v1514_v63 }
 0x9c1   : > { %v1504_v2 = vadd.f32 %v1503_v1, %v2950_v23 }
 0x9c3   : > { %v1517_v6 = vsel %vm961_vm7, %v1504_v2, -inf }
 0x9c4   : > { %1518 = vmax.xlane.f32.xlu1 %v1517_v6  ;;  %1521 = vmax.xlane.f32.xlu0 %v1520_v7 }
 0xa49   : > { %v1516_v8 = vpop.xlane.xlu0 %1515 }
 0xa4a   : > { %v1523_v9 = vsub.f32 %v1501_v56, %v1516_v8 }
 0xa4c   : > { %v1526_v10 = vmul.f32 1.442695, %v1523_v9 }
 0xa4d   : > { %v1519_v11 = vpop.xlane.xlu1 %1518  ;;  %v1522_v15 = vpop.xlane.xlu0 %1521 }
 0xa4e   : > { %2622 = vpow2.f32 %v1526_v10  ;;  %v1524_v12 = vsub.f32 %v1504_v2, %v1519_v11  ;;  %v1525_v22 = vsub.f32 %v1509_v62, %v1522_v15 }
 0xa50   : > { %v1528_v13 = vmul.f32 1.442695, %v1524_v12  ;;  %v1530_v14 = vmul.f32 1.442695, %v1525_v22 }
 0xa52   : > { %2624 = vpow2.f32 %v1528_v13 }
 0xa53   : > { %2626 = vpow2.f32 %v1530_v14 }
 0xa5b   : > { %v2623_v16 = vpop.eup %2622 }
 0xa5c   : > { %v1532_v23 = vsel %vm961_vm7, %v2623_v16, 0.0 }
 0xa5d   : > { %1533 = vadd.xlane.f32.xlu0 %v1532_v23 }
 0xa5f   : > { %v2625_v17 = vpop.eup %2624 }
 0xa60   : > { %v2627_v18 = vpop.eup %2626  ;;  %v1535_v19 = vsel %vm961_vm7, %v2625_v17, 0.0 }
 0xa61   : > { %1536 = vadd.xlane.f32.xlu0 %v1535_v19  ;;  %v1538_v20 = vsel %vm961_vm7, %v2627_v18, 0.0 }
 0xa62   : > { %1539 = vadd.xlane.f32.xlu1 %v1538_v20  ;;  %v2570_v20 = vld [vmem:[%s2855_s5 + $0x8] sm:$0xff]  }
 0xa63   : > { %2491 = vmatprep.subr.bf16.mxu0 %v2570_v20 }
 0xa64   : > { %2492 = vmatpush3.bf16.msra.mxu0 %v2570_v20 }
 0xa73   : > { %1549 = vrot.lane.b32.xlu1 %v2924_v0, %s2706_s23 }
 0xa77   : > { %1238 = vrot.lane.b32.xlu1 %v3005_v58, %s2707_s24  ;;  %1551 = vrot.lane.b32.xlu0 %v2918_v60, %s2706_s23 }
 0xa7b   : > { %1240 = vrot.lane.b32.xlu1 %v3007_v61, %s2707_s24  ;;  %1242 = vrot.lane.b32.xlu0 %v3003_v57, %s2707_s24 }
 0xa7f   : > { %1426 = vrot.lane.b32.xlu1 %v1409_v51, %s2708_s28  ;;  %1428 = vrot.lane.b32.xlu0 %v1412_v53, %s2708_s28 }
 0xa83   : > { %1430 = vrot.lane.b32.xlu1 %v2465_v50, %s2708_s28 }
 0xae6   : > { %v1534_v21 = vpop.xlane.xlu0 %1533 }
 0xae7   : > { %2628 = vrcp.f32 %v1534_v21  ;;  %v2571_v21 = vld [vmem:[%s2855_s5] sm:$0xff]  }
 0xae8   : > { %2493 = vmatprep.subr.bf16.mxu0 %v2571_v21 }
 0xae9   : > { %2494 = vmatpush3.bf16.msra.mxu0 %v2571_v21 }
 0xaea   : > { %v1537_v24 = vpop.xlane.xlu0 %1536 }
 0xaeb   : > { %v1540_v0 = vpop.xlane.xlu1 %1539  ;;  %2630 = vrcp.f32 %v1537_v24 }
 0xaec   : > { %2632 = vrcp.f32 %v1540_v0 }
 0xaee   : > { %v1552_v25 = vpop.permute.xlu0 %1551 }
 0xaef   : > { %v1550_v58 = vpop.permute.xlu1 %1549  ;;  %v1561_v60 = vsel %vm1008_vm8, %v1552_v25, 0  ;;  %2530 = vmatprep.subr.msk.bf16.mxu1 %vm1008_vm8, %v1552_v25 }
 0xaf0   : > { %2476 = vmatpush3.bf16.msra.mxu1 %v1561_v60 }
 0xaf1   : > { %2477 = vmatprep.subr.bf16.mxu1 %v1550_v58 }
 0xaf2   : > { %v1243_v57 = vpop.permute.xlu0 %1242 }
 0xaf3   : > { %v1239_v61 = vpop.permute.xlu1 %1238  ;;  %1250 = vst.msk [vmem:[#allocation3 + $0x10] sm:$0xff] %vm1247_vm9, %v1243_v57 }
 0xaf4   : > { %1248 = vst.msk [vmem:[#allocation3] sm:$0xff] %vm1247_vm9, %v1239_v61  ;;  %2478 = vmatpush3.bf16.msra.mxu1 %v1550_v58  ;;  %v2629_v26 = vpop.eup %2628 }
 0xaf5   : > { %v1544_v31 = vmul.f32 %v2629_v26, %v2623_v16  ;;  %2483 = vmatprep.subr.bf16.mxu1 %v2568_v38 }
 0xaf6   : > { %v1429_v27 = vpop.permute.xlu0 %1428 }
 0xaf7   : > { %v1241_v28 = vpop.permute.xlu1 %1240 }
 0xaf8   : > { %v2631_v29 = vpop.eup %2630  ;;  %1249 = vst.msk [vmem:[#allocation3 + $0x8] sm:$0xff] %vm1247_vm9, %v1241_v28 }
 0xaf9   : > { %v2633_v30 = vpop.eup %2632  ;;  %1437 = vst.msk [vmem:[#allocation3 + $0x8] sm:$0xff] %vm1435_vm10, %v1429_v27  ;;  %v1545_v32 = vmul.f32 %v2631_v29, %v2625_v17 }
 0xafa   : > { %v1546_v33 = vmul.f32 %v2633_v30, %v2627_v18  ;;  %v2329_v30 = vld [vmem:[%s687_s15] ss:$0 sm:$0xff] }
 0xafb   : > { %v1427_v34 = vpop.permute.xlu1 %1426  ;;  %v1547_v35 = vpack.c.bf16 %v1545_v32, %v1544_v31 }
 0xafc   : > { %1436 = vst.msk [vmem:[#allocation3] sm:$0xff] %vm1435_vm10, %v1427_v34  ;;  %v1548_v36 = vpack.c.bf16 %v1546_v33, %v1546_v33  ;;  %v2330_v34 = vld [vmem:[%s690_s21] ss:$0 sm:$0xff] }
 0xafd   : > { %2479 = vmatprep.mubr.msk.bf16.mxu1 %vm961_vm7, %v1547_v35 }
 0xafe   : > { %2480 = vmatmul.mubr.msk.bf16.vlgmr.msra.gmra.mxu1 %vm961_vm7, %v1548_v36 }
 0xaff   : > { %v1431_v37 = vpop.permute.xlu1 %1430  ;;  %2484 = vmatpush3.bf16.msra.mxu1 %v2568_v38 }
 0xb00   : > { %1438 = vst.msk [vmem:[#allocation3 + $0x10] sm:$0xff] %vm1435_vm10, %v1431_v37  ;;  %2485 = vmatprep.subr.bf16.mxu1 %v2569_v39 }
 0xb03   : > { %2486 = vmatpush3.bf16.msra.mxu1 %v2569_v39 }
 0xbbe   : > { %v2481_v40 = vpop.f32.mrf.mxu1 }
 0xbc0   : > { %v1597_v41 = vpop.f32.mrf.mxu1 }
 0xbc1   : > { %1614 = vrot.lane.b32.xlu0 %v1597_v41, %s2709_s17 }
 0xbc2   : > { %v2482_v42 = vpop.f32.mrf.mxu1 }
 0xbc4   : > { %v1600_v43 = vpop.f32.mrf.mxu1 }
 0xbc5   : > { %1618 = vrot.lane.b32.xlu0 %v2481_v40, %s2709_s17  ;;  %1616 = vrot.lane.b32.xlu1 %v1600_v43, %s2709_s17 }
 0xc33   : > { %v1615_v44 = vpop.permute.xlu0 %1614 }
 0xc34   : > { %1624 = vst.msk [vmem:[#allocation3] sm:$0xff] %vm1623_vm11, %v1615_v44  ;;  %v2572_v44 = vld [vmem:[%s2865_s0 + $0x38] sm:$0xff]  }
 0xc35   : > { %2499 = vmatprep.subr.bf16.mxu1 %v2572_v44 }
 0xc37   : > { %v1617_v45 = vpop.permute.xlu1 %1616  ;;  %v1619_v46 = vpop.permute.xlu0 %1618 }
 0xc38   : > { %1625 = vst.msk [vmem:[#allocation3 + $0x8] sm:$0xff] %vm1623_vm11, %v1617_v45  ;;  %1626 = vst.msk [vmem:[#allocation3 + $0x10] sm:$0xff] %vm1623_vm11, %v1619_v46  ;;  %v2573_v45 = vld [vmem:[%s2865_s0 + $0x30] sm:$0xff]   ;;  %v2574_v46 = vld [vmem:[%s2865_s0 + $0x28] sm:$0xff]  }
 0xc3b   : > { %v1627_v47 = vld [vmem:[#allocation3] sm:$0xff] }
 0xc3f   : > { %v1628_v48 = vld [vmem:[#allocation3 + $0x8] sm:$0xff]  ;;  %v1629_v49 = vld [vmem:[#allocation3 + $0x10] sm:$0xff] }
 0xc40   : > { %v1634_v50 = vpack.c.bf16 %v1628_v48, %v1627_v47  ;;  %v1635_v51 = vpack.c.bf16 %v1629_v49, %v1629_v49  ;;  %v2575_v47 = vld [vmem:[%s2865_s0 + $0x20] sm:$0xff]   ;;  %v2576_v48 = vld [vmem:[%s2865_s0 + $0x18] sm:$0xff]   ;;  %v2577_v49 = vld [vmem:[%s2865_s0 + $0x10] sm:$0xff]  }
 0xc42   : > { %2487 = vmatprep.mubr.msk.bf16.mxu1 %vm724_vm1, %v1634_v50  ;;  %v2578_v50 = vld [vmem:[%s2865_s0 + $0x8] sm:$0xff]  }
 0xc43   : > { %2488 = vmatmul.mubr.msk.bf16.vlgmr.msra.gmra.mxu1 %vm724_vm1, %v1635_v51  ;;  %v2579_v51 = vld [vmem:[%s2865_s0] sm:$0xff]  }
 0xc44   : > { %2500 = vmatpush3.bf16.msra.mxu1 %v2572_v44 }
 0xc45   : > { %2501 = vmatprep.subr.bf16.mxu1 %v2573_v45 }
 0xc48   : > { %2502 = vmatpush3.bf16.msra.mxu1 %v2573_v45 }
 0xc49   : > { %2503 = vmatprep.subr.bf16.mxu1 %v2574_v46 }
 0xc4c   : > { %2504 = vmatpush3.bf16.msra.mxu1 %v2574_v46 }
 0xc4d   : > { %2505 = vmatprep.subr.bf16.mxu1 %v2575_v47 }
 0xc50   : > { %2506 = vmatpush3.bf16.msra.mxu1 %v2575_v47 }
 0xc51   : > { %2507 = vmatprep.subr.bf16.mxu1 %v2576_v48 }
 0xc54   : > { %2508 = vmatpush3.bf16.msra.mxu1 %v2576_v48 }
 0xc55   : > { %2509 = vmatprep.subr.bf16.mxu1 %v2577_v49 }
 0xc58   : > { %2510 = vmatpush3.bf16.msra.mxu1 %v2577_v49 }
 0xc59   : > { %2511 = vmatprep.subr.bf16.mxu1 %v2578_v50 }
 0xc5c   : > { %2512 = vmatpush3.bf16.msra.mxu1 %v2578_v50 }
 0xc5d   : > { %2513 = vmatprep.subr.bf16.mxu1 %v2579_v51 }
 0xc60   : > { %2514 = vmatpush3.bf16.msra.mxu1 %v2579_v51 }
 0xd03   : > { %v2489_v52 = vpop.f32.mrf.mxu1 }
 0xd04   : > { %v1704_v63 = vadd.f32 %v2489_v52, %v2883_v4  ;;  %v2331_v52 = vld [vmem:[%s698_s7] ss:$0 sm:$0xff] }
 0xd05   : > { %v1688_v53 = vpop.f32.mrf.mxu1 }
 0xd06   : > { %v1702_v54 = vadd.f32 %v1688_v53, %v2881_v3  ;;  %v3076_v3 = vadd.f32 %v2328_v55, %v1704_v63 }
 0xd07   : > { %v2490_v56 = vpop.f32.mrf.mxu1 }
 0xd08   : > { %v3068_v59 = vadd.f32 %v2328_v55, %v1702_v54  ;;  %v1723_v8 = vsel %vm724_vm1, %v3076_v3, 0.0 }
 0xd09   : > { %v1691_v62 = vpop.f32.mrf.mxu1 }
 0xd0a   : > { %v1703_v1 = vadd.f32 %v1691_v62, %v2885_v5  ;;  %v1717_v2 = vsel %vm724_vm1, %v3068_v59, 0.0 }
 0xd0b   : > { %1718 = vadd.xlane.f32.xlu1 %v1717_v2 }
 0xd0c   : > { %v3074_v6 = vadd.f32 %v2328_v55, %v1703_v1 }
 0xd0e   : > { %v1720_v7 = vsel %vm724_vm1, %v3074_v6, 0.0 }
 0xd0f   : > { %1721 = vadd.xlane.f32.xlu0 %v1720_v7 }
 0xd13   : > { %1724 = vadd.xlane.f32.xlu0 %v1723_v8 }
 0xd94   : > { %v1719_v9 = vpop.xlane.xlu1 %1718 }
 0xd95   : > { %v1726_v4 = vmul.f32 0.03125, %v1719_v9 }
 0xd97   : > { %v1729_v5 = vsub.f32 %v3068_v59, %v1726_v4 }
 0xd98   : > { %v1722_v10 = vpop.xlane.xlu0 %1721 }
 0xd99   : > { %v1727_v11 = vmul.f32 0.03125, %v1722_v10  ;;  %v1732_v15 = vmul.f32 %v1729_v5, %v1729_v5 }
 0xd9b   : > { %v1730_v12 = vsub.f32 %v3074_v6, %v1727_v11  ;;  %v1735_v22 = vsel %vm724_vm1, %v1732_v15, 0.0 }
 0xd9c   : > { %1736 = vadd.xlane.f32.xlu0 %v1735_v22  ;;  %v1725_v13 = vpop.xlane.xlu0 %1724 }
 0xd9d   : > { %v1728_v14 = vmul.f32 0.03125, %v1725_v13  ;;  %v1733_v16 = vmul.f32 %v1730_v12, %v1730_v12 }
 0xd9f   : > { %v1731_v23 = vsub.f32 %v3076_v3, %v1728_v14  ;;  %v1738_v17 = vsel %vm724_vm1, %v1733_v16, 0.0 }
 0xda0   : > { %1739 = vadd.xlane.f32.xlu1 %v1738_v17 }
 0xda1   : > { %v1734_v18 = vmul.f32 %v1731_v23, %v1731_v23 }
 0xda3   : > { %v1741_v19 = vsel %vm724_vm1, %v1734_v18, 0.0 }
 0xda4   : > { %1742 = vadd.xlane.f32.xlu0 %v1741_v19 }
 0xe25   : > { %v1737_v24 = vpop.xlane.xlu0 %1736 }
 0xe26   : > { %v1744_v0 = vmul.f32 0.03125, %v1737_v24 }
 0xe28   : > { %v1747_v25 = vadd.f32 1e-05, %v1744_v0 }
 0xe29   : > { %v1740_v58 = vpop.xlane.xlu1 %1739 }
 0xe2a   : > { %2634 = vrsqrt.f32 %v1747_v25  ;;  %v1745_v60 = vmul.f32 0.03125, %v1740_v58 }
 0xe2c   : > { %v1748_v57 = vadd.f32 1e-05, %v1745_v60 }
 0xe2d   : > { %v1743_v61 = vpop.xlane.xlu0 %1742 }
 0xe2e   : > { %2636 = vrsqrt.f32 %v1748_v57  ;;  %v1746_v26 = vmul.f32 0.03125, %v1743_v61 }
 0xe30   : > { %v1749_v27 = vadd.f32 1e-05, %v1746_v26 }
 0xe32   : > { %2638 = vrsqrt.f32 %v1749_v27 }
 0xe37   : > { %v2635_v28 = vpop.eup %2634 }
 0xe38   : > { %v1753_v29 = vmul.f32 %v2635_v28, %v1729_v5 }
 0xe3a   : > { %v1762_v33 = vmul.f32 %v2329_v30, %v1753_v29 }
 0xe3b   : > { %v2637_v31 = vpop.eup %2636 }
 0xe3c   : > { %v1754_v32 = vmul.f32 %v2637_v31, %v1730_v12  ;;  %v1771_v38 = vadd.f32 %v2330_v34, %v1762_v33 }
 0xe3e   : > { %v1763_v35 = vmul.f32 %v2329_v30, %v1754_v32 }
 0xe3f   : > { %v2639_v36 = vpop.eup %2638 }
 0xe40   : > { %v1755_v37 = vmul.f32 %v2639_v36, %v1731_v23  ;;  %v1772_v39 = vadd.f32 %v2330_v34, %v1763_v35 }
 0xe42   : > { %v1778_v40 = vpack.c.bf16 %v1772_v39, %v1771_v38  ;;  %v1764_v41 = vmul.f32 %v2329_v30, %v1755_v37 }
 0xe44   : > { %2495 = vmatprep.mubr.msk.bf16.mxu0 %vm724_vm1, %v1778_v40  ;;  %v1773_v42 = vadd.f32 %v2330_v34, %v1764_v41 }
 0xe46   : > { %v1779_v43 = vpack.c.bf16 %v1773_v42, %v1773_v42 }
 0xe48   : > { %2496 = vmatmul.mubr.msk.bf16.vlgmr.msra.gmra.mxu0 %vm724_vm1, %v1779_v43 }
 0xf08   : > { %v2497_v53 = vpop.f32.mrf.mxu0 }
 0xf09   : > { %v3115_v54 = vadd.f32 %v2497_v53, %v2331_v52 }
 0xf0a   : > { %v1839_v55 = vpop.f32.mrf.mxu0 }
 0xf0b   : > { %v3118_v56 = vmul.f32 0.70710677, %v3115_v54  ;;  %v3120_v62 = vadd.f32 %v2331_v52, %v1839_v55  ;;  %v2710_v55 = vmov -1.0  }
 0xf0c   : > { %v2498_v63 = vpop.f32.mrf.mxu0 }
 0xf0d   : > { %v1867_v1 = vand.u32 2147483647, %v3118_v56  ;;  %v3124_v2 = vmul.f32 0.70710677, %v3120_v62  ;;  %vm1861_vm12 = vcmp.ge.f32.partialorder %v3118_v56, 0.0 }
 0xf0e   : > { %v1842_v7 = vpop.f32.mrf.mxu0  ;;  %v1864_v63 = vsel %vm1861_vm12, 1.0, %v2710_v55 }
 0xf0f   : > { %v1870_v8 = vmul.f32 0.3275911, %v1867_v1  ;;  %v1865_v9 = vand.u32 2147483647, %v3124_v2  ;;  %v3127_v4 = vadd.f32 %v2331_v52, %v1842_v7  ;;  %v1909_v14 = vsub.f32 0.0, %v1867_v1 }
 0xf10   : > { %vm1859_vm13 = vcmp.ge.f32.partialorder %v3124_v2, 0.0  ;;  %v1855_v2 = vmul.f32 0.5, %v3115_v54 }
 0xf11   : > { %v1873_v5 = vadd.f32 1.0, %v1870_v8  ;;  %v1868_v10 = vmul.f32 0.3275911, %v1865_v9  ;;  %v3130_v11 = vmul.f32 0.70710677, %v3127_v4  ;;  %v1907_v16 = vsub.f32 0.0, %v1865_v9 }
 0xf12   : > { %v1912_v23 = vmul.f32 %v1909_v14, %v1867_v1 }
 0xf13   : > { %2640 = vrcp.f32 %v1873_v5  ;;  %v1871_v15 = vadd.f32 1.0, %v1868_v10  ;;  %v1866_v12 = vand.u32 2147483647, %v3130_v11  ;;  %v1910_v18 = vmul.f32 %v1907_v16, %v1865_v9 }
 0xf14   : > { %v1917_v21 = vmul.f32 1.442695, %v1912_v23  ;;  %v1862_v5 = vsel %vm1859_vm13, 1.0, %v2710_v55  ;;  %vm1860_vm14 = vcmp.ge.f32.partialorder %v3130_v11, 0.0  ;;  %v1853_v16 = vmul.f32 0.5, %v3120_v62 }
 0xf15   : > { %2642 = vrcp.f32 %v1871_v15  ;;  %v1869_v22 = vmul.f32 0.3275911, %v1866_v12  ;;  %v1908_v19 = vsub.f32 0.0, %v1866_v12  ;;  %v1913_v58 = vmul.f32 1.442695, %v1910_v18 }
 0xf16   : > { %v1863_v56 = vsel %vm1860_vm14, 1.0, %v2710_v55  ;;  %v1854_v23 = vmul.f32 0.5, %v3127_v4  ;;  %v2336_v11 = vld [vmem:[%s706_s1] ss:$0 sm:$0xff] }
 0xf17   : > { %v1872_v13 = vadd.f32 1.0, %v1869_v22  ;;  %v1911_v60 = vmul.f32 %v1908_v19, %v1866_v12 }
 0xf19   : > { %2644 = vrcp.f32 %v1872_v13  ;;  %v1915_v30 = vmul.f32 1.442695, %v1911_v60 }
 0xf1a   : > { %2646 = vpow2.f32 %v1917_v21 }
 0xf1b   : > { %2648 = vpow2.f32 %v1913_v58 }
 0xf1c   : > { %2650 = vpow2.f32 %v1915_v30 }
 0xf20   : > { %v2641_v17 = vpop.eup %2640 }
 0xf21   : > { %v1882_v20 = vmul.f32 1.0614054, %v2641_v17 }
 0xf22   : > { %v2643_v24 = vpop.eup %2642 }
 0xf23   : > { %v1885_v0 = vadd.f32 -1.4531521, %v1882_v20  ;;  %v1880_v25 = vmul.f32 1.0614054, %v2643_v24 }
 0xf25   : > { %v1888_v57 = vmul.f32 %v2641_v17, %v1885_v0  ;;  %v1883_v61 = vadd.f32 -1.4531521, %v1880_v25 }
 0xf26   : > { %v2645_v26 = vpop.eup %2644 }
 0xf27   : > { %v1891_v27 = vadd.f32 1.4214138, %v1888_v57  ;;  %v1886_v28 = vmul.f32 %v2643_v24, %v1883_v61  ;;  %v1881_v29 = vmul.f32 1.0614054, %v2645_v26  ;;  %v2647_v44 = vpop.eup %2646 }
 0xf28   : > { %v2649_v50 = vpop.eup %2648 }
 0xf29   : > { %v1894_v31 = vmul.f32 %v2641_v17, %v1891_v27  ;;  %v1889_v32 = vadd.f32 1.4214138, %v1886_v28  ;;  %v1884_v33 = vadd.f32 -1.4531521, %v1881_v29  ;;  %v2651_v8 = vpop.eup %2650 }
 0xf2b   : > { %v1897_v34 = vadd.f32 -0.28449672, %v1894_v31  ;;  %v1892_v35 = vmul.f32 %v2643_v24, %v1889_v32  ;;  %v1887_v36 = vmul.f32 %v2645_v26, %v1884_v33 }
 0xf2d   : > { %v1900_v37 = vmul.f32 %v2641_v17, %v1897_v34  ;;  %v1895_v38 = vadd.f32 -0.28449672, %v1892_v35  ;;  %v1890_v39 = vadd.f32 1.4214138, %v1887_v36 }
 0xf2f   : > { %v1903_v40 = vadd.f32 0.2548296, %v1900_v37  ;;  %v1898_v41 = vmul.f32 %v2643_v24, %v1895_v38  ;;  %v1893_v42 = vmul.f32 %v2645_v26, %v1890_v39 }
 0xf31   : > { %v1906_v43 = vmul.f32 %v2641_v17, %v1903_v40  ;;  %v1901_v45 = vadd.f32 0.2548296, %v1898_v41  ;;  %v1896_v46 = vadd.f32 -0.28449672, %v1893_v42 }
 0xf33   : > { %v1921_v47 = vmul.f32 %v2647_v44, %v1906_v43  ;;  %v1904_v48 = vmul.f32 %v2643_v24, %v1901_v45  ;;  %v1899_v49 = vmul.f32 %v2645_v26, %v1896_v46 }
 0xf35   : > { %v1924_v51 = vsub.f32 1.0, %v1921_v47  ;;  %v1919_v52 = vmul.f32 %v2649_v50, %v1904_v48  ;;  %v1902_v53 = vadd.f32 0.2548296, %v1899_v49 }
 0xf37   : > { %v1922_v1 = vsub.f32 1.0, %v1919_v52  ;;  %v1905_v7 = vmul.f32 %v2645_v26, %v1902_v53  ;;  %v1927_v9 = vmul.f32 %v1924_v51, %v1864_v63 }
 0xf39   : > { %v1925_v10 = vmul.f32 %v1922_v1, %v1862_v5  ;;  %v1920_v15 = vmul.f32 %v2651_v8, %v1905_v7  ;;  %v1930_v22 = vadd.f32 1.0, %v1927_v9 }
 0xf3b   : > { %v1923_v12 = vsub.f32 1.0, %v1920_v15  ;;  %v1928_v13 = vadd.f32 1.0, %v1925_v10  ;;  %v1933_v18 = vmul.f32 %v1930_v22, %v1855_v2 }
 0xf3d   : > { %v1926_v14 = vmul.f32 %v1923_v12, %v1863_v56  ;;  %v1931_v19 = vmul.f32 %v1928_v13, %v1853_v16  ;;  %v1951_v24 = vpack.c.bf16 %v1933_v18, %v1933_v18 }
 0xf3f   : > { %v1929_v17 = vadd.f32 1.0, %v1926_v14 }
 0xf41   : > { %v1932_v20 = vmul.f32 %v1929_v17, %v1854_v23 }
 0xf43   : > { %v1950_v21 = vpack.c.bf16 %v1932_v20, %v1931_v19 }
 0xf45   : > { %2515 = vmatprep.mubr.bf16.mxu1 %v1950_v21 }
 0xf46   : > { %2516 = vmatmul.mubr.bf16.vlgmr.msra.gmra.mxu1 %v1951_v24 }
0x1006   : > { %v2517_v0 = vpop.f32.mrf.mxu1 }
0x1007   : > { %v2050_v25 = vadd.f32 %v2517_v0, %v2336_v11 }
0x1008   : > { %v2041_v54 = vpop.f32.mrf.mxu1 }
0x1009   : > { %v2057_v62 = vadd.f32 %v2050_v25, %v3076_v3  ;;  %v2042_v58 = vadd.f32 %v2336_v11, %v2041_v54 }
0x100a   : > { %v2518_v4 = vpop.f32.mrf.mxu1 }
0x100b   : > { %v2055_v60 = vadd.f32 %v2042_v58, %v3068_v59  ;;  %2061 = sbr.rel (%p2345_p5) target bundleno = 4114 (0x1012), region = 96 }
0x100c   : > { %v2044_v57 = vpop.f32.mrf.mxu1 }
0x100d   : > { %v2045_v61 = vadd.f32 %v2336_v11, %v2044_v57 }
0x100f   : > { %v2056_v26 = vadd.f32 %v2045_v61, %v3074_v6 }
0x1010   : > { %2062 = vst.msk [vmem:[#allocation4] sm:$0xff] %vm724_vm1, %v2055_v60  ;;  %2064 = vst.msk [vmem:[#allocation4 + $0x10] sm:$0xff] %vm724_vm1, %v2057_v62 }
0x1011   : > { %2063 = vst.msk [vmem:[#allocation4 + $0x8] sm:$0xff] %vm724_vm1, %v2056_v26 }
0x1012 PF: > { %p2346_p6 = scmp.ne.s32.totalorder %s2809_s25, 1 }
0x1013   : > { %s3223_s28 = sld [smem:[#allocation13_spill]] (!%p2346_p6) }
0x1014   : > { %2068 = sbr.rel (%p2346_p6) target bundleno = 4435 (0x1153), region = 100  ;;  %s3224_s29 = sld [smem:[#allocation14_spill]] (!%p2346_p6) }
0x1019   : > { %v2071_v3 = vsel %vm724_vm1, %v2055_v60, 0.0  ;;  %v2077_v59 = vsel %vm724_vm1, %v2057_v62, 0.0  ;;  %v2074_v6 = vsel %vm724_vm1, %v2056_v26, 0.0  ;;  %v2347_v52 = vld [vmem:[%s3223_s28] ss:$0 sm:$0xff] }
0x101a   : > { %2072 = vadd.xlane.f32.xlu0 %v2071_v3  ;;  %2078 = vadd.xlane.f32.xlu1 %v2077_v59  ;;  %v2348_v55 = vld [vmem:[%s3224_s29] ss:$0 sm:$0xff] }
0x101e   : > { %2075 = vadd.xlane.f32.xlu0 %v2074_v6 }
0x10a3   : > { %v2073_v27 = vpop.xlane.xlu0 %2072  ;;  %v2079_v28 = vpop.xlane.xlu1 %2078 }
0x10a4   : > { %v2080_v29 = vmul.f32 0.03125, %v2073_v27  ;;  %v2082_v30 = vmul.f32 0.03125, %v2079_v28 }
0x10a6   : > { %v2083_v31 = vsub.f32 %v2055_v60, %v2080_v29  ;;  %v2085_v32 = vsub.f32 %v2057_v62, %v2082_v30 }
0x10a7   : > { %v2076_v33 = vpop.xlane.xlu0 %2075 }
0x10a8   : > { %v2081_v34 = vmul.f32 0.03125, %v2076_v33  ;;  %v2086_v35 = vmul.f32 %v2083_v31, %v2083_v31  ;;  %v2088_v36 = vmul.f32 %v2085_v32, %v2085_v32 }
0x10aa   : > { %v2084_v37 = vsub.f32 %v2056_v26, %v2081_v34  ;;  %v2089_v38 = vsel %vm724_vm1, %v2086_v35, 0.0  ;;  %v2095_v39 = vsel %vm724_vm1, %v2088_v36, 0.0 }
0x10ab   : > { %2090 = vadd.xlane.f32.xlu1 %v2089_v38 }
0x10ac   : > { %v2087_v40 = vmul.f32 %v2084_v37, %v2084_v37 }
0x10ae   : > { %v2092_v41 = vsel %vm724_vm1, %v2087_v40, 0.0 }
0x10af   : > { %2096 = vadd.xlane.f32.xlu1 %v2095_v39  ;;  %2093 = vadd.xlane.f32.xlu0 %v2092_v41 }
0x1134   : > { %v2091_v42 = vpop.xlane.xlu1 %2090 }
0x1135   : > { %v2098_v43 = vmul.f32 0.03125, %v2091_v42 }
0x1137   : > { %v2101_v44 = vadd.f32 1e-05, %v2098_v43 }
0x1138   : > { %v2097_v45 = vpop.xlane.xlu1 %2096  ;;  %v2094_v46 = vpop.xlane.xlu0 %2093 }
0x1139   : > { %2652 = vrsqrt.f32 %v2101_v44  ;;  %v2100_v47 = vmul.f32 0.03125, %v2097_v45  ;;  %v2099_v48 = vmul.f32 0.03125, %v2094_v46 }
0x113b   : > { %v2103_v49 = vadd.f32 1e-05, %v2100_v47  ;;  %v2102_v50 = vadd.f32 1e-05, %v2099_v48 }
0x113d   : > { %2654 = vrsqrt.f32 %v2103_v49 }
0x113e   : > { %2656 = vrsqrt.f32 %v2102_v50 }
0x1146   : > { %v2653_v51 = vpop.eup %2652 }
0x1147   : > { %v2107_v53 = vmul.f32 %v2653_v51, %v2083_v31 }
0x1149   : > { %v2116_v63 = vmul.f32 %v2347_v52, %v2107_v53 }
0x114a   : > { %v2655_v1 = vpop.eup %2654 }
0x114b   : > { %v2657_v7 = vpop.eup %2656  ;;  %v2125_v8 = vadd.f32 %v2348_v55, %v2116_v63  ;;  %v2109_v9 = vmul.f32 %v2655_v1, %v2085_v32 }
0x114c   : > { %v2108_v5 = vmul.f32 %v2657_v7, %v2084_v37 }
0x114d   : > { %2128 = vst.msk [vmem:[#allocation4] sm:$0xff] %vm724_vm1, %v2125_v8  ;;  %v2118_v10 = vmul.f32 %v2347_v52, %v2109_v9 }
0x114e   : > { %v2117_v15 = vmul.f32 %v2347_v52, %v2108_v5 }
0x114f   : > { %v2127_v12 = vadd.f32 %v2348_v55, %v2118_v10 }
0x1150   : > { %v2126_v22 = vadd.f32 %v2348_v55, %v2117_v15 }
0x1151   : > { %2130 = vst.msk [vmem:[#allocation4 + $0x10] sm:$0xff] %vm724_vm1, %v2127_v12 }
0x1152   : > { %2129 = vst.msk [vmem:[#allocation4 + $0x8] sm:$0xff] %vm724_vm1, %v2126_v22 }
0x1153 PF: > { %p2535_p7 = scmp.eq.s32.totalorder %s2809_s25, 1  ;;  %s2711_s18 = smov [#allocation4]  }
0x1154   : > { %s2137_s30 = sshll.u32 %s2711_s18, 4  ;;  %s2138_s30 = int_to_ptr.vmem [resolvable:$true] %s2137_s30 }
0x1155   : > { %s2658_s5 = scalar_lea.vmem %s2138_s30, 384  ;;  %p2665_p11 = scmp.lt.s32.totalorder %s2138_s30, %s2138_s30 }
0x1156   : > { %p2659_p8 = scmp.ne.s32.totalorder %s2138_s30, %s2658_s5  ;;  %p2666_p12 = scmp.lt.s32.totalorder %s2658_s5, %s2658_s5 }
0x1158   : > { %p2660_p9 = pnand %p2659_p8, %p2535_p7  ;;  %p2667_p13 = por %p2666_p12, %p2665_p11 }
0x115a   : > { %p2661_p10 = pneg %p2660_p9 }
0x115c   : > { %p2668_p0 = pnand %p2667_p13, %p2661_p10 }
0x115e   : > { %2671 = shalt.err (!%p2668_p0)
}
0x115f   : > { %s2712_s20 = smov 128   ;;  %s3225_s15 = sld [smem:[#allocation15_spill]] }
0x1165   : > { %2532 = dma.vmem_to_hbm [thread:$0]  (%p2535_p7), %s2138_s30, 384, %s3225_s15, [#allocation5], %s2712_s20, %s2712_s20, %s2707_s24  }
0x1166   : > { %2687 = dma.done.wait (%p2535_p7), [#allocation5], 384  }
0x1167   : > { %2689 = vsyncadd (%p2535_p7), [#allocation5], 4294966912 }
0x1168 PF: > { %s3226_s21 = sld [smem:[#allocation7_spill]] }
0x116e   : > { %s28_s24 = sadd.s32 1, %s3226_s21  }
0x116f   : > { %p25_p1 = scmp.ge.s32.totalorder %s28_s24, 4  }
0x1171   :  { %27 = sbr.rel (!%p25_p1) target bundleno = 9 (0x9), region = 160 }
0x1176   :  { %2153 = vsyncpa [#allocation5], 1 }
0x1177   :  { %2155 = vsyncpa [#allocation5 + $0x1], 1 }

</bundles_post_ra>
